<compile_context>
chip_gen: v7x
topology: tpu7x:2x2x1
jax: 0.10.0
libtpu: 0.0.40
codegen_flags: <defaults>
</compile_context>

<pallas_src>
import functools
import jax
import jax.numpy as jnp
from jax.experimental import pallas as pl
from jax.experimental.pallas import tpu as pltpu

# ---- module hyperparameters (PROD = False) ----
N_EMBD = 64
N_HEAD = 6
HEAD_SIZE = N_EMBD // N_HEAD          # = 10
H_ALL = N_HEAD * HEAD_SIZE            # = 60 (note: != n_embd, as in the PyTorch code)
HS_PAD = 16                           # head_size padded to a layout-friendly width
H_PAD = N_HEAD * HS_PAD               # = 96
FF_HIDDEN = 4 * N_EMBD                # = 256
LN_EPS = 1e-5


def _layernorm(v, gamma, beta):
    mu = jnp.mean(v, axis=-1, keepdims=True)
    var = jnp.mean((v - mu) ** 2, axis=-1, keepdims=True)
    return (v - mu) * jax.lax.rsqrt(var + LN_EPS) * gamma + beta


def _block_kernel(n_head, hs_pad, head_size,
                  x_ref,
                  wqkv_ref, wp_ref, bp_ref,
                  ln1g_ref, ln1b_ref, ln2g_ref, ln2b_ref,
                  w1_ref, b1_ref, w2_ref, b2_ref,
                  o_ref):
    bt, T, C = x_ref.shape
    R = bt * T
    hp = n_head * hs_pad

    x = x_ref[...].reshape(R, C)                  # f32, all rows of this batch-block

    # ---- sub-block 1: x = x + MHA(LN1(x)) ----
    xn = _layernorm(x, ln1g_ref[0], ln1b_ref[0])  # f32 elementwise

    # fused, lane-dense Q|K|V projection: one (R, C) @ (C, 3*H_PAD) bf16 matmul
    qkv = jnp.dot(xn.astype(jnp.bfloat16), wqkv_ref[...],
                  preferred_element_type=jnp.float32)          # (R, 3*hp) f32

    # single causal mask, built once per invocation (additive; large finite
    # negative instead of -inf so fully-masked reuse can't produce NaNs)
    row = jax.lax.broadcasted_iota(jnp.int32, (T, T), 0)
    col = jax.lax.broadcasted_iota(jnp.int32, (T, T), 1)
    neg = jnp.where(col <= row, 0.0, -1e30)[None]              # (1, T, T) f32

    scale = float(head_size) ** -0.5              # PyTorch uses the *logical* head size
    head_outs = []
    for h in range(n_head):                       # static unroll (6 heads)
        q_h = qkv[:, h * hs_pad:(h + 1) * hs_pad]
        k_h = qkv[:, hp + h * hs_pad: hp + (h + 1) * hs_pad]
        v_h = qkv[:, 2 * hp + h * hs_pad: 2 * hp + (h + 1) * hs_pad]
        q_h = q_h.astype(jnp.bfloat16).reshape(bt, T, hs_pad)
        k_h = k_h.astype(jnp.bfloat16).reshape(bt, T, hs_pad)
        v_h = v_h.astype(jnp.bfloat16).reshape(bt, T, hs_pad)

        s = jnp.einsum("btd,bsd->bts", q_h, k_h,
                       preferred_element_type=jnp.float32) * scale + neg
        s = s - jnp.max(s, axis=-1, keepdims=True)             # f32 softmax
        p = jnp.exp(s)
        p = p * pl.reciprocal(jnp.sum(p, axis=-1, keepdims=True), approx=True)
        oh = jnp.einsum("bts,bsd->btd", p.astype(jnp.bfloat16), v_h,
                        preferred_element_type=jnp.float32)    # (bt, T, hs_pad)
        head_outs.append(oh.reshape(R, hs_pad))

    # one K=96 output projection instead of 6 K=16 matmuls + 6 adds
    att = jnp.concatenate(head_outs, axis=-1)                  # (R, hp) f32
    sa = jnp.dot(att.astype(jnp.bfloat16), wp_ref[...],
                 preferred_element_type=jnp.float32)           # (R, C) f32

    x1 = x + sa + bp_ref[0]                        # residual 1 (f32)

    # ---- sub-block 2: x = x + FFN(LN2(x)) ----
    xn2 = _layernorm(x1, ln2g_ref[0], ln2b_ref[0])
    h1 = jnp.dot(xn2.astype(jnp.bfloat16), w1_ref[...],
                 preferred_element_type=jnp.float32) + b1_ref[0]
    h1 = jnp.maximum(h1, 0.0)                      # ReLU (f32)
    ff = jnp.dot(h1.astype(jnp.bfloat16), w2_ref[...],
                 preferred_element_type=jnp.float32) + b2_ref[0]

    o_ref[...] = (x1 + ff).reshape(bt, T, C)


def _vmem_capacity_bytes():
    try:
        cap = getattr(pltpu.get_tpu_info(), "vmem_capacity_bytes", None)
        if cap:
            return int(cap)
    except Exception:
        pass
    return 64 << 20   # conservative fallback (v7x per-TC VMEM)


def _per_batch_vmem_bytes(T, C):
    """Rough per-batch-element f32 working set per grid step."""
    per_row = 7 * C + 3 * H_PAD + H_PAD + FF_HIDDEN   # x/xn/x1/xn2/sa/ff/out, qkv, att, h1
    live = 4 * (T * per_row + 2 * N_HEAD * T * T)     # + per-head scores/probs
    io_bufs = 2 * (2 * T * C * 4)                     # double-buffered in/out blocks
    return live + io_bufs


def _pick_bt(B, T, C):
    """Batches per grid step.

    Target: R = bt*T >= 256 matmul rows (amortize ~0.35us/step and fill the
    MXU M dim), capped by a VMEM budget.  Only keep >=2 'parallel' steps
    (v7x megacore) when each step still yields >= 256 rows; on single-TC
    parts the grid is a serial loop, so never split just for "parallelism".
    """
    budget = int(_vmem_capacity_bytes() * 0.4)
    cap = max(1, budget // max(1, _per_batch_vmem_bytes(T, C)))
    divisors = [d for d in range(B, 0, -1) if B % d == 0]
    for d in divisors:                       # 2+ MXU-sized parallel steps if possible
        if d <= cap and d < B and d * T >= 256:
            return d
    for d in divisors:                       # otherwise: biggest block that fits VMEM
        if d <= cap:
            return d
    return 1


def block_forward(x, kernel_params, bt=None):
    """x: (B, T, C) float32; kernel_params: output of prepare_kernel_params."""
    B, T, C = x.shape
    if bt is None:
        bt = _pick_bt(B, T, C)
    assert B % bt == 0
    grid = (B // bt,)

    kernel = functools.partial(_block_kernel, N_HEAD, HS_PAD, HEAD_SIZE)

    def const_spec(shape):
        n = len(shape)
        return pl.BlockSpec(shape, lambda b, _n=n: (0,) * _n)

    in_specs = [pl.BlockSpec((bt, T, C), lambda b: (b, 0, 0))]
    in_specs += [const_spec(p.shape) for p in kernel_params]
    out_specs = pl.BlockSpec((bt, T, C), lambda b: (b, 0, 0))

    vmem_limit = min(int(_vmem_capacity_bytes() * 0.75), 100 << 20)

    return pl.pallas_call(
        kernel,
        out_shape=jax.ShapeDtypeStruct((B, T, C), jnp.float32),
        grid_spec=pltpu.PrefetchScalarGridSpec(
            num_scalar_prefetch=0,
            grid=grid,
            in_specs=in_specs,
            out_specs=out_specs,
        ),
        compiler_params=pltpu.CompilerParams(
            dimension_semantics=("parallel",),
            vmem_limit_bytes=vmem_limit),
    )(x, *kernel_params)


def init_params(key):
    """Logical (PyTorch-layout) parameters; weights stored (in, out), f32."""
    ks = jax.random.split(key, 12)
    s = 0.02
    wq = jax.random.normal(ks[0], (N_EMBD, H_ALL), jnp.float32) * s
    wk = jax.random.normal(ks[1], (N_EMBD, H_ALL), jnp.float32) * s
    wv = jax.random.normal(ks[2], (N_EMBD, H_ALL), jnp.float32) * s
    wp = jax.random.normal(ks[3], (H_ALL, N_EMBD), jnp.float32) * s
    bp = jax.random.normal(ks[4], (1, N_EMBD), jnp.float32) * s
    ln1g = jnp.ones((1, N_EMBD), jnp.float32)
    ln1b = jnp.zeros((1, N_EMBD), jnp.float32)
    ln2g = jnp.ones((1, N_EMBD), jnp.float32)
    ln2b = jnp.zeros((1, N_EMBD), jnp.float32)
    w1 = jax.random.normal(ks[5], (N_EMBD, FF_HIDDEN), jnp.float32) * s
    b1 = jax.random.normal(ks[6], (1, FF_HIDDEN), jnp.float32) * s
    w2 = jax.random.normal(ks[7], (FF_HIDDEN, N_EMBD), jnp.float32) * s
    b2 = jax.random.normal(ks[8], (1, N_EMBD), jnp.float32) * s
    return [wq, wk, wv, wp, bp, ln1g, ln1b, ln2g, ln2b, w1, b1, w2, b2]


def prepare_kernel_params(params):
    """Fuse + zero-pad + bf16-cast the logical params into kernel layout (once)."""
    wq, wk, wv, wp, bp, ln1g, ln1b, ln2g, ln2b, w1, b1, w2, b2 = params

    def pad_head_cols(w):                          # (C, n_head*hs) -> (C, n_head*hs_pad)
        w3 = w.reshape(N_EMBD, N_HEAD, HEAD_SIZE)
        pad = jnp.zeros((N_EMBD, N_HEAD, HS_PAD - HEAD_SIZE), w.dtype)
        return jnp.concatenate([w3, pad], axis=-1).reshape(N_EMBD, H_PAD)

    # fused Q|K|V projection weight, bf16: (C, 3*H_PAD)
    wqkv = jnp.concatenate(
        [pad_head_cols(wq), pad_head_cols(wk), pad_head_cols(wv)],
        axis=-1).astype(jnp.bfloat16)

    # output projection as a single (H_PAD, C) matrix (zero rows for padded
    # head dims), bf16
    wp3 = wp.reshape(N_HEAD, HEAD_SIZE, N_EMBD)
    wp_pad = jnp.concatenate(
        [wp3, jnp.zeros((N_HEAD, HS_PAD - HEAD_SIZE, N_EMBD), wp.dtype)],
        axis=1).reshape(H_PAD, N_EMBD).astype(jnp.bfloat16)

    # biases / LN params stay f32 (elementwise path)
    return [wqkv, wp_pad, bp, ln1g, ln1b, ln2g, ln2b,
            w1.astype(jnp.bfloat16), b1, w2.astype(jnp.bfloat16), b2]


def block_reference(x, params):
    """Pure-JAX f32 reference of the PyTorch Block forward (eval mode)."""
    wq, wk, wv, wp, bp, ln1g, ln1b, ln2g, ln2b, w1, b1, w2, b2 = params
    B, T, C = x.shape
    xn = _layernorm(x, ln1g[0], ln1b[0])
    q = xn @ wq
    k = xn @ wk
    v = xn @ wv
    q = q.reshape(B, T, N_HEAD, HEAD_SIZE).transpose(0, 2, 1, 3)
    k = k.reshape(B, T, N_HEAD, HEAD_SIZE).transpose(0, 2, 1, 3)
    v = v.reshape(B, T, N_HEAD, HEAD_SIZE).transpose(0, 2, 1, 3)
    wei = jnp.einsum("bhtd,bhsd->bhts", q, k) * (HEAD_SIZE ** -0.5)
    mask = jnp.tril(jnp.ones((T, T), bool))
    wei = jnp.where(mask, wei, -jnp.inf)
    wei = jax.nn.softmax(wei, axis=-1)
    att = jnp.einsum("bhts,bhsd->bhtd", wei, v)
    att = att.transpose(0, 2, 1, 3).reshape(B, T, N_HEAD * HEAD_SIZE)
    x1 = x + att @ wp + bp[0]
    xn2 = _layernorm(x1, ln2g[0], ln2b[0])
    ff = jnp.maximum(xn2 @ w1 + b1[0], 0.0) @ w2 + b2[0]
    return x1 + ff


if __name__ == "__main__":
    key = jax.random.PRNGKey(0)
    kx, kp = jax.random.split(key)
    B, T, C = 2, 8, N_EMBD          # T=8 <= block_size=128
    x = jax.random.normal(kx, (B, T, C), jnp.float32)
    params = init_params(kp)
    kparams = prepare_kernel_params(params)

    out = jax.block_until_ready(block_forward(x, kparams))
    ref = block_reference(x, params)

    assert out.shape == (B, T, C)
    # bf16 matmul operands + approx reciprocal in the softmax -> loosened tolerance
    assert jnp.allclose(out, ref, atol=2e-2, rtol=2e-2), "mismatch vs reference"
    print("KERNEL_OK")
</pallas_src>

<mosaic_0001>
module attributes {stable_mosaic.version = 11 : i64} {
  func.func @_block_kernel(%arg0: i32, %arg1: memref<2x8x64xf32, #tpu.memory_space<vmem>>, %arg2: memref<64x288xbf16, #tpu.memory_space<vmem>>, %arg3: memref<96x64xbf16, #tpu.memory_space<vmem>>, %arg4: memref<1x64xf32, #tpu.memory_space<vmem>>, %arg5: memref<1x64xf32, #tpu.memory_space<vmem>>, %arg6: memref<1x64xf32, #tpu.memory_space<vmem>>, %arg7: memref<1x64xf32, #tpu.memory_space<vmem>>, %arg8: memref<1x64xf32, #tpu.memory_space<vmem>>, %arg9: memref<64x256xbf16, #tpu.memory_space<vmem>>, %arg10: memref<1x256xf32, #tpu.memory_space<vmem>>, %arg11: memref<256x64xbf16, #tpu.memory_space<vmem>>, %arg12: memref<1x64xf32, #tpu.memory_space<vmem>>, %arg13: memref<2x8x64xf32, #tpu.memory_space<vmem>>) attributes {dimension_semantics = [#tpu.dimension_semantics<parallel>], iteration_bounds = array<i64: 1>, scalar_prefetch = 0 : i64, scratch_operands = 0 : i64, tpu.core_type = #tpu.core_type<tc>, window_params = [{transform_indices = @transform_0, window_bounds = array<i64: 2, 8, 64>}, {pipeline_mode = #tpu.pipeline_mode<synchronous>, transform_indices = @transform_1, window_bounds = array<i64: 64, 288>}, {pipeline_mode = #tpu.pipeline_mode<synchronous>, transform_indices = @transform_2, window_bounds = array<i64: 96, 64>}, {pipeline_mode = #tpu.pipeline_mode<synchronous>, transform_indices = @transform_3, window_bounds = array<i64: 1, 64>}, {pipeline_mode = #tpu.pipeline_mode<synchronous>, transform_indices = @transform_4, window_bounds = array<i64: 1, 64>}, {pipeline_mode = #tpu.pipeline_mode<synchronous>, transform_indices = @transform_5, window_bounds = array<i64: 1, 64>}, {pipeline_mode = #tpu.pipeline_mode<synchronous>, transform_indices = @transform_6, window_bounds = array<i64: 1, 64>}, {pipeline_mode = #tpu.pipeline_mode<synchronous>, transform_indices = @transform_7, window_bounds = array<i64: 1, 64>}, {pipeline_mode = #tpu.pipeline_mode<synchronous>, transform_indices = @transform_8, window_bounds = array<i64: 64, 256>}, {pipeline_mode = #tpu.pipeline_mode<synchronous>, transform_indices = @transform_9, window_bounds = array<i64: 1, 256>}, {pipeline_mode = #tpu.pipeline_mode<synchronous>, transform_indices = @transform_10, window_bounds = array<i64: 256, 64>}, {pipeline_mode = #tpu.pipeline_mode<synchronous>, transform_indices = @transform_11, window_bounds = array<i64: 1, 64>}, {transform_indices = @transform_12, window_bounds = array<i64: 2, 8, 64>}]} {
    %c0 = arith.constant 0 : index
    %c0_0 = arith.constant 0 : index
    %c0_1 = arith.constant 0 : index
    %0 = vector.load %arg1[%c0, %c0_0, %c0_1] : memref<2x8x64xf32, #tpu.memory_space<vmem>>, vector<2x8x64xf32>
    %1 = vector.shape_cast %0 : vector<2x8x64xf32> to vector<16x64xf32>
    %c0_2 = arith.constant 0 : index
    %c0_3 = arith.constant 0 : index
    %2 = vector.load %arg5[%c0_2, %c0_3] : memref<1x64xf32, #tpu.memory_space<vmem>>, vector<1x64xf32>
    %3 = vector.shape_cast %2 : vector<1x64xf32> to vector<64xf32>
    %c0_4 = arith.constant 0 : index
    %c0_5 = arith.constant 0 : index
    %4 = vector.load %arg6[%c0_4, %c0_5] : memref<1x64xf32, #tpu.memory_space<vmem>>, vector<1x64xf32>
    %5 = vector.shape_cast %4 : vector<1x64xf32> to vector<64xf32>
    %cst = arith.constant dense<0.000000e+00> : vector<16xf32>
    %6 = vector.multi_reduction <add>, %1, %cst [1] : vector<16x64xf32> to vector<16xf32>
    %7 = vector.shape_cast %6 : vector<16xf32> to vector<16x1xf32>
    %cst_6 = arith.constant 6.400000e+01 : f32
    %8 = vector.broadcast %cst_6 : f32 to vector<16x1xf32>
    %9 = arith.divf %7, %8 : vector<16x1xf32>
    %10 = vector.broadcast %9 : vector<16x1xf32> to vector<16x64xf32>
    %11 = arith.subf %1, %10 : vector<16x64xf32>
    %12 = arith.mulf %11, %11 : vector<16x64xf32>
    %cst_7 = arith.constant dense<0.000000e+00> : vector<16xf32>
    %13 = vector.multi_reduction <add>, %12, %cst_7 [1] : vector<16x64xf32> to vector<16xf32>
    %14 = vector.shape_cast %13 : vector<16xf32> to vector<16x1xf32>
    %cst_8 = arith.constant 6.400000e+01 : f32
    %15 = vector.broadcast %cst_8 : f32 to vector<16x1xf32>
    %16 = arith.divf %14, %15 : vector<16x1xf32>
    %17 = vector.broadcast %9 : vector<16x1xf32> to vector<16x64xf32>
    %18 = arith.subf %1, %17 : vector<16x64xf32>
    %cst_9 = arith.constant 9.99999974E-6 : f32
    %19 = vector.broadcast %cst_9 : f32 to vector<16x1xf32>
    %20 = arith.addf %16, %19 : vector<16x1xf32>
    %21 = math.rsqrt %20 : vector<16x1xf32>
    %22 = vector.broadcast %21 : vector<16x1xf32> to vector<16x64xf32>
    %23 = arith.mulf %18, %22 : vector<16x64xf32>
    %24 = vector.shape_cast %3 : vector<64xf32> to vector<1x64xf32>
    %25 = vector.broadcast %24 : vector<1x64xf32> to vector<16x64xf32>
    %26 = arith.mulf %23, %25 : vector<16x64xf32>
    %27 = vector.shape_cast %5 : vector<64xf32> to vector<1x64xf32>
    %28 = vector.broadcast %27 : vector<1x64xf32> to vector<16x64xf32>
    %29 = arith.addf %26, %28 : vector<16x64xf32>
    %30 = arith.truncf %29 : vector<16x64xf32> to vector<16x64xbf16>
    %c0_10 = arith.constant 0 : index
    %c0_11 = arith.constant 0 : index
    %31 = vector.load %arg2[%c0_10, %c0_11] : memref<64x288xbf16, #tpu.memory_space<vmem>>, vector<64x288xbf16>
    %cst_12 = arith.constant dense<0.000000e+00> : vector<16x288xf32>
    %32 = tpu.matmul %30, %31, %cst_12 {dimension_numbers = #tpu.dot_dimension_numbers<[1], [0], [0], [1], [0, 0, 1, 1], [], []>} : vector<16x64xbf16>, vector<64x288xbf16>, vector<16x288xf32> -> vector<16x288xf32>
    %33 = tpu.iota {dimensions = array<i32: 0>} : vector<8x8xi32>
    %34 = tpu.iota {dimensions = array<i32: 1>} : vector<8x8xi32>
    %35 = arith.cmpi sle, %34, %33 : vector<8x8xi32>
    %cst_13 = arith.constant 0.000000e+00 : f32
    %cst_14 = arith.constant -1.000000e+30 : f32
    %36 = vector.broadcast %cst_13 : f32 to vector<8x8xf32>
    %37 = vector.broadcast %cst_14 : f32 to vector<8x8xf32>
    %38 = arith.select %35, %36, %37 : vector<8x8xi1>, vector<8x8xf32>
    %39 = vector.shape_cast %38 : vector<8x8xf32> to vector<1x8x8xf32>
    %40 = vector.extract_strided_slice %32 {offsets = [0, 0], sizes = [16, 16], strides = [1, 1]} : vector<16x288xf32> to vector<16x16xf32>
    %41 = vector.extract_strided_slice %32 {offsets = [0, 96], sizes = [16, 16], strides = [1, 1]} : vector<16x288xf32> to vector<16x16xf32>
    %42 = vector.extract_strided_slice %32 {offsets = [0, 192], sizes = [16, 16], strides = [1, 1]} : vector<16x288xf32> to vector<16x16xf32>
    %43 = arith.truncf %40 : vector<16x16xf32> to vector<16x16xbf16>
    %44 = vector.shape_cast %43 : vector<16x16xbf16> to vector<2x8x16xbf16>
    %45 = arith.truncf %41 : vector<16x16xf32> to vector<16x16xbf16>
    %46 = vector.shape_cast %45 : vector<16x16xbf16> to vector<2x8x16xbf16>
    %47 = arith.truncf %42 : vector<16x16xf32> to vector<16x16xbf16>
    %48 = vector.shape_cast %47 : vector<16x16xbf16> to vector<2x8x16xbf16>
    "tpu.trace_start"() <{level = 10 : i32, message = "btd,bsd->bts"}> : () -> ()
    %cst_15 = arith.constant dense<0.000000e+00> : vector<2x8x8xf32>
    %49 = tpu.matmul %44, %46, %cst_15 {dimension_numbers = #tpu.dot_dimension_numbers<[2], [2], [1], [1], [0, 0, 0, 1, 1, 1], [0], [0]>} : vector<2x8x16xbf16>, vector<2x8x16xbf16>, vector<2x8x8xf32> -> vector<2x8x8xf32>
    "tpu.trace_stop"() : () -> ()
    %cst_16 = arith.constant 0.316227764 : f32
    %50 = vector.broadcast %cst_16 : f32 to vector<2x8x8xf32>
    %51 = arith.mulf %49, %50 : vector<2x8x8xf32>
    %52 = vector.broadcast %39 : vector<1x8x8xf32> to vector<2x8x8xf32>
    %53 = arith.addf %51, %52 : vector<2x8x8xf32>
    %cst_17 = arith.constant dense<0xFF800000> : vector<2x8xf32>
    %54 = vector.multi_reduction <maximumf>, %53, %cst_17 [2] : vector<2x8x8xf32> to vector<2x8xf32>
    %55 = vector.shape_cast %54 : vector<2x8xf32> to vector<2x8x1xf32>
    %56 = vector.broadcast %55 : vector<2x8x1xf32> to vector<2x8x8xf32>
    %57 = arith.subf %53, %56 : vector<2x8x8xf32>
    %58 = math.exp %57 : vector<2x8x8xf32>
    %cst_18 = arith.constant dense<0.000000e+00> : vector<2x8xf32>
    %59 = vector.multi_reduction <add>, %58, %cst_18 [2] : vector<2x8x8xf32> to vector<2x8xf32>
    %60 = vector.shape_cast %59 : vector<2x8xf32> to vector<2x8x1xf32>
    %61 = tpu.reciprocal %60 {approx = true} : vector<2x8x1xf32> -> vector<2x8x1xf32>
    %62 = vector.broadcast %61 : vector<2x8x1xf32> to vector<2x8x8xf32>
    %63 = arith.mulf %58, %62 : vector<2x8x8xf32>
    %64 = arith.truncf %63 : vector<2x8x8xf32> to vector<2x8x8xbf16>
    "tpu.trace_start"() <{level = 10 : i32, message = "bts,bsd->btd"}> : () -> ()
    %cst_19 = arith.constant dense<0.000000e+00> : vector<2x8x16xf32>
    %65 = tpu.matmul %64, %48, %cst_19 {dimension_numbers = #tpu.dot_dimension_numbers<[2], [1], [1], [2], [0, 0, 0, 1, 1, 2], [0], [0]>} : vector<2x8x8xbf16>, vector<2x8x16xbf16>, vector<2x8x16xf32> -> vector<2x8x16xf32>
    "tpu.trace_stop"() : () -> ()
    %66 = vector.shape_cast %65 : vector<2x8x16xf32> to vector<16x16xf32>
    %67 = vector.extract_strided_slice %32 {offsets = [0, 16], sizes = [16, 16], strides = [1, 1]} : vector<16x288xf32> to vector<16x16xf32>
    %68 = vector.extract_strided_slice %32 {offsets = [0, 112], sizes = [16, 16], strides = [1, 1]} : vector<16x288xf32> to vector<16x16xf32>
    %69 = vector.extract_strided_slice %32 {offsets = [0, 208], sizes = [16, 16], strides = [1, 1]} : vector<16x288xf32> to vector<16x16xf32>
    %70 = arith.truncf %67 : vector<16x16xf32> to vector<16x16xbf16>
    %71 = vector.shape_cast %70 : vector<16x16xbf16> to vector<2x8x16xbf16>
    %72 = arith.truncf %68 : vector<16x16xf32> to vector<16x16xbf16>
    %73 = vector.shape_cast %72 : vector<16x16xbf16> to vector<2x8x16xbf16>
    %74 = arith.truncf %69 : vector<16x16xf32> to vector<16x16xbf16>
    %75 = vector.shape_cast %74 : vector<16x16xbf16> to vector<2x8x16xbf16>
    "tpu.trace_start"() <{level = 10 : i32, message = "btd,bsd->bts"}> : () -> ()
    %cst_20 = arith.constant dense<0.000000e+00> : vector<2x8x8xf32>
    %76 = tpu.matmul %71, %73, %cst_20 {dimension_numbers = #tpu.dot_dimension_numbers<[2], [2], [1], [1], [0, 0, 0, 1, 1, 1], [0], [0]>} : vector<2x8x16xbf16>, vector<2x8x16xbf16>, vector<2x8x8xf32> -> vector<2x8x8xf32>
    "tpu.trace_stop"() : () -> ()
    %cst_21 = arith.constant 0.316227764 : f32
    %77 = vector.broadcast %cst_21 : f32 to vector<2x8x8xf32>
    %78 = arith.mulf %76, %77 : vector<2x8x8xf32>
    %79 = vector.broadcast %39 : vector<1x8x8xf32> to vector<2x8x8xf32>
    %80 = arith.addf %78, %79 : vector<2x8x8xf32>
    %cst_22 = arith.constant dense<0xFF800000> : vector<2x8xf32>
    %81 = vector.multi_reduction <maximumf>, %80, %cst_22 [2] : vector<2x8x8xf32> to vector<2x8xf32>
    %82 = vector.shape_cast %81 : vector<2x8xf32> to vector<2x8x1xf32>
    %83 = vector.broadcast %82 : vector<2x8x1xf32> to vector<2x8x8xf32>
    %84 = arith.subf %80, %83 : vector<2x8x8xf32>
    %85 = math.exp %84 : vector<2x8x8xf32>
    %cst_23 = arith.constant dense<0.000000e+00> : vector<2x8xf32>
    %86 = vector.multi_reduction <add>, %85, %cst_23 [2] : vector<2x8x8xf32> to vector<2x8xf32>
    %87 = vector.shape_cast %86 : vector<2x8xf32> to vector<2x8x1xf32>
    %88 = tpu.reciprocal %87 {approx = true} : vector<2x8x1xf32> -> vector<2x8x1xf32>
    %89 = vector.broadcast %88 : vector<2x8x1xf32> to vector<2x8x8xf32>
    %90 = arith.mulf %85, %89 : vector<2x8x8xf32>
    %91 = arith.truncf %90 : vector<2x8x8xf32> to vector<2x8x8xbf16>
    "tpu.trace_start"() <{level = 10 : i32, message = "bts,bsd->btd"}> : () -> ()
    %cst_24 = arith.constant dense<0.000000e+00> : vector<2x8x16xf32>
    %92 = tpu.matmul %91, %75, %cst_24 {dimension_numbers = #tpu.dot_dimension_numbers<[2], [1], [1], [2], [0, 0, 0, 1, 1, 2], [0], [0]>} : vector<2x8x8xbf16>, vector<2x8x16xbf16>, vector<2x8x16xf32> -> vector<2x8x16xf32>
    "tpu.trace_stop"() : () -> ()
    %93 = vector.shape_cast %92 : vector<2x8x16xf32> to vector<16x16xf32>
    %94 = vector.extract_strided_slice %32 {offsets = [0, 32], sizes = [16, 16], strides = [1, 1]} : vector<16x288xf32> to vector<16x16xf32>
    %95 = vector.extract_strided_slice %32 {offsets = [0, 128], sizes = [16, 16], strides = [1, 1]} : vector<16x288xf32> to vector<16x16xf32>
    %96 = vector.extract_strided_slice %32 {offsets = [0, 224], sizes = [16, 16], strides = [1, 1]} : vector<16x288xf32> to vector<16x16xf32>
    %97 = arith.truncf %94 : vector<16x16xf32> to vector<16x16xbf16>
    %98 = vector.shape_cast %97 : vector<16x16xbf16> to vector<2x8x16xbf16>
    %99 = arith.truncf %95 : vector<16x16xf32> to vector<16x16xbf16>
    %100 = vector.shape_cast %99 : vector<16x16xbf16> to vector<2x8x16xbf16>
    %101 = arith.truncf %96 : vector<16x16xf32> to vector<16x16xbf16>
    %102 = vector.shape_cast %101 : vector<16x16xbf16> to vector<2x8x16xbf16>
    "tpu.trace_start"() <{level = 10 : i32, message = "btd,bsd->bts"}> : () -> ()
    %cst_25 = arith.constant dense<0.000000e+00> : vector<2x8x8xf32>
    %103 = tpu.matmul %98, %100, %cst_25 {dimension_numbers = #tpu.dot_dimension_numbers<[2], [2], [1], [1], [0, 0, 0, 1, 1, 1], [0], [0]>} : vector<2x8x16xbf16>, vector<2x8x16xbf16>, vector<2x8x8xf32> -> vector<2x8x8xf32>
    "tpu.trace_stop"() : () -> ()
    %cst_26 = arith.constant 0.316227764 : f32
    %104 = vector.broadcast %cst_26 : f32 to vector<2x8x8xf32>
    %105 = arith.mulf %103, %104 : vector<2x8x8xf32>
    %106 = vector.broadcast %39 : vector<1x8x8xf32> to vector<2x8x8xf32>
    %107 = arith.addf %105, %106 : vector<2x8x8xf32>
    %cst_27 = arith.constant dense<0xFF800000> : vector<2x8xf32>
    %108 = vector.multi_reduction <maximumf>, %107, %cst_27 [2] : vector<2x8x8xf32> to vector<2x8xf32>
    %109 = vector.shape_cast %108 : vector<2x8xf32> to vector<2x8x1xf32>
    %110 = vector.broadcast %109 : vector<2x8x1xf32> to vector<2x8x8xf32>
    %111 = arith.subf %107, %110 : vector<2x8x8xf32>
    %112 = math.exp %111 : vector<2x8x8xf32>
    %cst_28 = arith.constant dense<0.000000e+00> : vector<2x8xf32>
    %113 = vector.multi_reduction <add>, %112, %cst_28 [2] : vector<2x8x8xf32> to vector<2x8xf32>
    %114 = vector.shape_cast %113 : vector<2x8xf32> to vector<2x8x1xf32>
    %115 = tpu.reciprocal %114 {approx = true} : vector<2x8x1xf32> -> vector<2x8x1xf32>
    %116 = vector.broadcast %115 : vector<2x8x1xf32> to vector<2x8x8xf32>
    %117 = arith.mulf %112, %116 : vector<2x8x8xf32>
    %118 = arith.truncf %117 : vector<2x8x8xf32> to vector<2x8x8xbf16>
    "tpu.trace_start"() <{level = 10 : i32, message = "bts,bsd->btd"}> : () -> ()
    %cst_29 = arith.constant dense<0.000000e+00> : vector<2x8x16xf32>
    %119 = tpu.matmul %118, %102, %cst_29 {dimension_numbers = #tpu.dot_dimension_numbers<[2], [1], [1], [2], [0, 0, 0, 1, 1, 2], [0], [0]>} : vector<2x8x8xbf16>, vector<2x8x16xbf16>, vector<2x8x16xf32> -> vector<2x8x16xf32>
    "tpu.trace_stop"() : () -> ()
    %120 = vector.shape_cast %119 : vector<2x8x16xf32> to vector<16x16xf32>
    %121 = vector.extract_strided_slice %32 {offsets = [0, 48], sizes = [16, 16], strides = [1, 1]} : vector<16x288xf32> to vector<16x16xf32>
    %122 = vector.extract_strided_slice %32 {offsets = [0, 144], sizes = [16, 16], strides = [1, 1]} : vector<16x288xf32> to vector<16x16xf32>
    %123 = vector.extract_strided_slice %32 {offsets = [0, 240], sizes = [16, 16], strides = [1, 1]} : vector<16x288xf32> to vector<16x16xf32>
    %124 = arith.truncf %121 : vector<16x16xf32> to vector<16x16xbf16>
    %125 = vector.shape_cast %124 : vector<16x16xbf16> to vector<2x8x16xbf16>
    %126 = arith.truncf %122 : vector<16x16xf32> to vector<16x16xbf16>
    %127 = vector.shape_cast %126 : vector<16x16xbf16> to vector<2x8x16xbf16>
    %128 = arith.truncf %123 : vector<16x16xf32> to vector<16x16xbf16>
    %129 = vector.shape_cast %128 : vector<16x16xbf16> to vector<2x8x16xbf16>
    "tpu.trace_start"() <{level = 10 : i32, message = "btd,bsd->bts"}> : () -> ()
    %cst_30 = arith.constant dense<0.000000e+00> : vector<2x8x8xf32>
    %130 = tpu.matmul %125, %127, %cst_30 {dimension_numbers = #tpu.dot_dimension_numbers<[2], [2], [1], [1], [0, 0, 0, 1, 1, 1], [0], [0]>} : vector<2x8x16xbf16>, vector<2x8x16xbf16>, vector<2x8x8xf32> -> vector<2x8x8xf32>
    "tpu.trace_stop"() : () -> ()
    %cst_31 = arith.constant 0.316227764 : f32
    %131 = vector.broadcast %cst_31 : f32 to vector<2x8x8xf32>
    %132 = arith.mulf %130, %131 : vector<2x8x8xf32>
    %133 = vector.broadcast %39 : vector<1x8x8xf32> to vector<2x8x8xf32>
    %134 = arith.addf %132, %133 : vector<2x8x8xf32>
    %cst_32 = arith.constant dense<0xFF800000> : vector<2x8xf32>
    %135 = vector.multi_reduction <maximumf>, %134, %cst_32 [2] : vector<2x8x8xf32> to vector<2x8xf32>
    %136 = vector.shape_cast %135 : vector<2x8xf32> to vector<2x8x1xf32>
    %137 = vector.broadcast %136 : vector<2x8x1xf32> to vector<2x8x8xf32>
    %138 = arith.subf %134, %137 : vector<2x8x8xf32>
    %139 = math.exp %138 : vector<2x8x8xf32>
    %cst_33 = arith.constant dense<0.000000e+00> : vector<2x8xf32>
    %140 = vector.multi_reduction <add>, %139, %cst_33 [2] : vector<2x8x8xf32> to vector<2x8xf32>
    %141 = vector.shape_cast %140 : vector<2x8xf32> to vector<2x8x1xf32>
    %142 = tpu.reciprocal %141 {approx = true} : vector<2x8x1xf32> -> vector<2x8x1xf32>
    %143 = vector.broadcast %142 : vector<2x8x1xf32> to vector<2x8x8xf32>
    %144 = arith.mulf %139, %143 : vector<2x8x8xf32>
    %145 = arith.truncf %144 : vector<2x8x8xf32> to vector<2x8x8xbf16>
    "tpu.trace_start"() <{level = 10 : i32, message = "bts,bsd->btd"}> : () -> ()
    %cst_34 = arith.constant dense<0.000000e+00> : vector<2x8x16xf32>
    %146 = tpu.matmul %145, %129, %cst_34 {dimension_numbers = #tpu.dot_dimension_numbers<[2], [1], [1], [2], [0, 0, 0, 1, 1, 2], [0], [0]>} : vector<2x8x8xbf16>, vector<2x8x16xbf16>, vector<2x8x16xf32> -> vector<2x8x16xf32>
    "tpu.trace_stop"() : () -> ()
    %147 = vector.shape_cast %146 : vector<2x8x16xf32> to vector<16x16xf32>
    %148 = vector.extract_strided_slice %32 {offsets = [0, 64], sizes = [16, 16], strides = [1, 1]} : vector<16x288xf32> to vector<16x16xf32>
    %149 = vector.extract_strided_slice %32 {offsets = [0, 160], sizes = [16, 16], strides = [1, 1]} : vector<16x288xf32> to vector<16x16xf32>
    %150 = vector.extract_strided_slice %32 {offsets = [0, 256], sizes = [16, 16], strides = [1, 1]} : vector<16x288xf32> to vector<16x16xf32>
    %151 = arith.truncf %148 : vector<16x16xf32> to vector<16x16xbf16>
    %152 = vector.shape_cast %151 : vector<16x16xbf16> to vector<2x8x16xbf16>
    %153 = arith.truncf %149 : vector<16x16xf32> to vector<16x16xbf16>
    %154 = vector.shape_cast %153 : vector<16x16xbf16> to vector<2x8x16xbf16>
    %155 = arith.truncf %150 : vector<16x16xf32> to vector<16x16xbf16>
    %156 = vector.shape_cast %155 : vector<16x16xbf16> to vector<2x8x16xbf16>
    "tpu.trace_start"() <{level = 10 : i32, message = "btd,bsd->bts"}> : () -> ()
    %cst_35 = arith.constant dense<0.000000e+00> : vector<2x8x8xf32>
    %157 = tpu.matmul %152, %154, %cst_35 {dimension_numbers = #tpu.dot_dimension_numbers<[2], [2], [1], [1], [0, 0, 0, 1, 1, 1], [0], [0]>} : vector<2x8x16xbf16>, vector<2x8x16xbf16>, vector<2x8x8xf32> -> vector<2x8x8xf32>
    "tpu.trace_stop"() : () -> ()
    %cst_36 = arith.constant 0.316227764 : f32
    %158 = vector.broadcast %cst_36 : f32 to vector<2x8x8xf32>
    %159 = arith.mulf %157, %158 : vector<2x8x8xf32>
    %160 = vector.broadcast %39 : vector<1x8x8xf32> to vector<2x8x8xf32>
    %161 = arith.addf %159, %160 : vector<2x8x8xf32>
    %cst_37 = arith.constant dense<0xFF800000> : vector<2x8xf32>
    %162 = vector.multi_reduction <maximumf>, %161, %cst_37 [2] : vector<2x8x8xf32> to vector<2x8xf32>
    %163 = vector.shape_cast %162 : vector<2x8xf32> to vector<2x8x1xf32>
    %164 = vector.broadcast %163 : vector<2x8x1xf32> to vector<2x8x8xf32>
    %165 = arith.subf %161, %164 : vector<2x8x8xf32>
    %166 = math.exp %165 : vector<2x8x8xf32>
    %cst_38 = arith.constant dense<0.000000e+00> : vector<2x8xf32>
    %167 = vector.multi_reduction <add>, %166, %cst_38 [2] : vector<2x8x8xf32> to vector<2x8xf32>
    %168 = vector.shape_cast %167 : vector<2x8xf32> to vector<2x8x1xf32>
    %169 = tpu.reciprocal %168 {approx = true} : vector<2x8x1xf32> -> vector<2x8x1xf32>
    %170 = vector.broadcast %169 : vector<2x8x1xf32> to vector<2x8x8xf32>
    %171 = arith.mulf %166, %170 : vector<2x8x8xf32>
    %172 = arith.truncf %171 : vector<2x8x8xf32> to vector<2x8x8xbf16>
    "tpu.trace_start"() <{level = 10 : i32, message = "bts,bsd->btd"}> : () -> ()
    %cst_39 = arith.constant dense<0.000000e+00> : vector<2x8x16xf32>
    %173 = tpu.matmul %172, %156, %cst_39 {dimension_numbers = #tpu.dot_dimension_numbers<[2], [1], [1], [2], [0, 0, 0, 1, 1, 2], [0], [0]>} : vector<2x8x8xbf16>, vector<2x8x16xbf16>, vector<2x8x16xf32> -> vector<2x8x16xf32>
    "tpu.trace_stop"() : () -> ()
    %174 = vector.shape_cast %173 : vector<2x8x16xf32> to vector<16x16xf32>
    %175 = vector.extract_strided_slice %32 {offsets = [0, 80], sizes = [16, 16], strides = [1, 1]} : vector<16x288xf32> to vector<16x16xf32>
    %176 = vector.extract_strided_slice %32 {offsets = [0, 176], sizes = [16, 16], strides = [1, 1]} : vector<16x288xf32> to vector<16x16xf32>
    %177 = vector.extract_strided_slice %32 {offsets = [0, 272], sizes = [16, 16], strides = [1, 1]} : vector<16x288xf32> to vector<16x16xf32>
    %178 = arith.truncf %175 : vector<16x16xf32> to vector<16x16xbf16>
    %179 = vector.shape_cast %178 : vector<16x16xbf16> to vector<2x8x16xbf16>
    %180 = arith.truncf %176 : vector<16x16xf32> to vector<16x16xbf16>
    %181 = vector.shape_cast %180 : vector<16x16xbf16> to vector<2x8x16xbf16>
    %182 = arith.truncf %177 : vector<16x16xf32> to vector<16x16xbf16>
    %183 = vector.shape_cast %182 : vector<16x16xbf16> to vector<2x8x16xbf16>
    "tpu.trace_start"() <{level = 10 : i32, message = "btd,bsd->bts"}> : () -> ()
    %cst_40 = arith.constant dense<0.000000e+00> : vector<2x8x8xf32>
    %184 = tpu.matmul %179, %181, %cst_40 {dimension_numbers = #tpu.dot_dimension_numbers<[2], [2], [1], [1], [0, 0, 0, 1, 1, 1], [0], [0]>} : vector<2x8x16xbf16>, vector<2x8x16xbf16>, vector<2x8x8xf32> -> vector<2x8x8xf32>
    "tpu.trace_stop"() : () -> ()
    %cst_41 = arith.constant 0.316227764 : f32
    %185 = vector.broadcast %cst_41 : f32 to vector<2x8x8xf32>
    %186 = arith.mulf %184, %185 : vector<2x8x8xf32>
    %187 = vector.broadcast %39 : vector<1x8x8xf32> to vector<2x8x8xf32>
    %188 = arith.addf %186, %187 : vector<2x8x8xf32>
    %cst_42 = arith.constant dense<0xFF800000> : vector<2x8xf32>
    %189 = vector.multi_reduction <maximumf>, %188, %cst_42 [2] : vector<2x8x8xf32> to vector<2x8xf32>
    %190 = vector.shape_cast %189 : vector<2x8xf32> to vector<2x8x1xf32>
    %191 = vector.broadcast %190 : vector<2x8x1xf32> to vector<2x8x8xf32>
    %192 = arith.subf %188, %191 : vector<2x8x8xf32>
    %193 = math.exp %192 : vector<2x8x8xf32>
    %cst_43 = arith.constant dense<0.000000e+00> : vector<2x8xf32>
    %194 = vector.multi_reduction <add>, %193, %cst_43 [2] : vector<2x8x8xf32> to vector<2x8xf32>
    %195 = vector.shape_cast %194 : vector<2x8xf32> to vector<2x8x1xf32>
    %196 = tpu.reciprocal %195 {approx = true} : vector<2x8x1xf32> -> vector<2x8x1xf32>
    %197 = vector.broadcast %196 : vector<2x8x1xf32> to vector<2x8x8xf32>
    %198 = arith.mulf %193, %197 : vector<2x8x8xf32>
    %199 = arith.truncf %198 : vector<2x8x8xf32> to vector<2x8x8xbf16>
    "tpu.trace_start"() <{level = 10 : i32, message = "bts,bsd->btd"}> : () -> ()
    %cst_44 = arith.constant dense<0.000000e+00> : vector<2x8x16xf32>
    %200 = tpu.matmul %199, %183, %cst_44 {dimension_numbers = #tpu.dot_dimension_numbers<[2], [1], [1], [2], [0, 0, 0, 1, 1, 2], [0], [0]>} : vector<2x8x8xbf16>, vector<2x8x16xbf16>, vector<2x8x16xf32> -> vector<2x8x16xf32>
    "tpu.trace_stop"() : () -> ()
    %201 = vector.shape_cast %200 : vector<2x8x16xf32> to vector<16x16xf32>
    %202 = tpu.concatenate %66, %93, %120, %147, %174, %201 in 1 : vector<16x16xf32>, vector<16x16xf32>, vector<16x16xf32>, vector<16x16xf32>, vector<16x16xf32>, vector<16x16xf32> -> vector<16x96xf32>
    %203 = arith.truncf %202 : vector<16x96xf32> to vector<16x96xbf16>
    %c0_45 = arith.constant 0 : index
    %c0_46 = arith.constant 0 : index
    %204 = vector.load %arg3[%c0_45, %c0_46] : memref<96x64xbf16, #tpu.memory_space<vmem>>, vector<96x64xbf16>
    %cst_47 = arith.constant dense<0.000000e+00> : vector<16x64xf32>
    %205 = tpu.matmul %203, %204, %cst_47 {dimension_numbers = #tpu.dot_dimension_numbers<[1], [0], [0], [1], [0, 0, 1, 1], [], []>} : vector<16x96xbf16>, vector<96x64xbf16>, vector<16x64xf32> -> vector<16x64xf32>
    %206 = arith.addf %1, %205 : vector<16x64xf32>
    %c0_48 = arith.constant 0 : index
    %c0_49 = arith.constant 0 : index
    %207 = vector.load %arg4[%c0_48, %c0_49] : memref<1x64xf32, #tpu.memory_space<vmem>>, vector<1x64xf32>
    %208 = vector.shape_cast %207 : vector<1x64xf32> to vector<64xf32>
    %209 = vector.shape_cast %208 : vector<64xf32> to vector<1x64xf32>
    %210 = vector.broadcast %209 : vector<1x64xf32> to vector<16x64xf32>
    %211 = arith.addf %206, %210 : vector<16x64xf32>
    %c0_50 = arith.constant 0 : index
    %c0_51 = arith.constant 0 : index
    %212 = vector.load %arg7[%c0_50, %c0_51] : memref<1x64xf32, #tpu.memory_space<vmem>>, vector<1x64xf32>
    %213 = vector.shape_cast %212 : vector<1x64xf32> to vector<64xf32>
    %c0_52 = arith.constant 0 : index
    %c0_53 = arith.constant 0 : index
    %214 = vector.load %arg8[%c0_52, %c0_53] : memref<1x64xf32, #tpu.memory_space<vmem>>, vector<1x64xf32>
    %215 = vector.shape_cast %214 : vector<1x64xf32> to vector<64xf32>
    %cst_54 = arith.constant dense<0.000000e+00> : vector<16xf32>
    %216 = vector.multi_reduction <add>, %211, %cst_54 [1] : vector<16x64xf32> to vector<16xf32>
    %217 = vector.shape_cast %216 : vector<16xf32> to vector<16x1xf32>
    %cst_55 = arith.constant 6.400000e+01 : f32
    %218 = vector.broadcast %cst_55 : f32 to vector<16x1xf32>
    %219 = arith.divf %217, %218 : vector<16x1xf32>
    %220 = vector.broadcast %219 : vector<16x1xf32> to vector<16x64xf32>
    %221 = arith.subf %211, %220 : vector<16x64xf32>
    %222 = arith.mulf %221, %221 : vector<16x64xf32>
    %cst_56 = arith.constant dense<0.000000e+00> : vector<16xf32>
    %223 = vector.multi_reduction <add>, %222, %cst_56 [1] : vector<16x64xf32> to vector<16xf32>
    %224 = vector.shape_cast %223 : vector<16xf32> to vector<16x1xf32>
    %cst_57 = arith.constant 6.400000e+01 : f32
    %225 = vector.broadcast %cst_57 : f32 to vector<16x1xf32>
    %226 = arith.divf %224, %225 : vector<16x1xf32>
    %227 = vector.broadcast %219 : vector<16x1xf32> to vector<16x64xf32>
    %228 = arith.subf %211, %227 : vector<16x64xf32>
    %cst_58 = arith.constant 9.99999974E-6 : f32
    %229 = vector.broadcast %cst_58 : f32 to vector<16x1xf32>
    %230 = arith.addf %226, %229 : vector<16x1xf32>
    %231 = math.rsqrt %230 : vector<16x1xf32>
    %232 = vector.broadcast %231 : vector<16x1xf32> to vector<16x64xf32>
    %233 = arith.mulf %228, %232 : vector<16x64xf32>
    %234 = vector.shape_cast %213 : vector<64xf32> to vector<1x64xf32>
    %235 = vector.broadcast %234 : vector<1x64xf32> to vector<16x64xf32>
    %236 = arith.mulf %233, %235 : vector<16x64xf32>
    %237 = vector.shape_cast %215 : vector<64xf32> to vector<1x64xf32>
    %238 = vector.broadcast %237 : vector<1x64xf32> to vector<16x64xf32>
    %239 = arith.addf %236, %238 : vector<16x64xf32>
    %240 = arith.truncf %239 : vector<16x64xf32> to vector<16x64xbf16>
    %c0_59 = arith.constant 0 : index
    %c0_60 = arith.constant 0 : index
    %241 = vector.load %arg9[%c0_59, %c0_60] : memref<64x256xbf16, #tpu.memory_space<vmem>>, vector<64x256xbf16>
    %cst_61 = arith.constant dense<0.000000e+00> : vector<16x256xf32>
    %242 = tpu.matmul %240, %241, %cst_61 {dimension_numbers = #tpu.dot_dimension_numbers<[1], [0], [0], [1], [0, 0, 1, 1], [], []>} : vector<16x64xbf16>, vector<64x256xbf16>, vector<16x256xf32> -> vector<16x256xf32>
    %c0_62 = arith.constant 0 : index
    %c0_63 = arith.constant 0 : index
    %243 = vector.load %arg10[%c0_62, %c0_63] : memref<1x256xf32, #tpu.memory_space<vmem>>, vector<1x256xf32>
    %244 = vector.shape_cast %243 : vector<1x256xf32> to vector<256xf32>
    %245 = vector.shape_cast %244 : vector<256xf32> to vector<1x256xf32>
    %246 = vector.broadcast %245 : vector<1x256xf32> to vector<16x256xf32>
    %247 = arith.addf %242, %246 : vector<16x256xf32>
    %cst_64 = arith.constant 0.000000e+00 : f32
    %248 = vector.broadcast %cst_64 : f32 to vector<16x256xf32>
    %249 = arith.maximumf %247, %248 : vector<16x256xf32>
    %250 = arith.truncf %249 : vector<16x256xf32> to vector<16x256xbf16>
    %c0_65 = arith.constant 0 : index
    %c0_66 = arith.constant 0 : index
    %251 = vector.load %arg11[%c0_65, %c0_66] : memref<256x64xbf16, #tpu.memory_space<vmem>>, vector<256x64xbf16>
    %cst_67 = arith.constant dense<0.000000e+00> : vector<16x64xf32>
    %252 = tpu.matmul %250, %251, %cst_67 {dimension_numbers = #tpu.dot_dimension_numbers<[1], [0], [0], [1], [0, 0, 1, 1], [], []>} : vector<16x256xbf16>, vector<256x64xbf16>, vector<16x64xf32> -> vector<16x64xf32>
    %c0_68 = arith.constant 0 : index
    %c0_69 = arith.constant 0 : index
    %253 = vector.load %arg12[%c0_68, %c0_69] : memref<1x64xf32, #tpu.memory_space<vmem>>, vector<1x64xf32>
    %254 = vector.shape_cast %253 : vector<1x64xf32> to vector<64xf32>
    %255 = vector.shape_cast %254 : vector<64xf32> to vector<1x64xf32>
    %256 = vector.broadcast %255 : vector<1x64xf32> to vector<16x64xf32>
    %257 = arith.addf %252, %256 : vector<16x64xf32>
    %258 = arith.addf %211, %257 : vector<16x64xf32>
    %259 = vector.shape_cast %258 : vector<16x64xf32> to vector<2x8x64xf32>
    %c0_70 = arith.constant 0 : index
    %c0_71 = arith.constant 0 : index
    %c0_72 = arith.constant 0 : index
    %260 = vector.load %arg13[%c0_70, %c0_71, %c0_72] : memref<2x8x64xf32, #tpu.memory_space<vmem>>, vector<2x8x64xf32>
    tpu.vector_store %arg13[%c0_70, %c0_71, %c0_72], %259 {strides = array<i32>} : memref<2x8x64xf32, #tpu.memory_space<vmem>>, vector<2x8x64xf32>,
    return
  }
  func.func @transform_0(%arg0: i32) -> (i32, i32, i32) {
    %c0_i32 = arith.constant 0 : i32
    %c0_i32_0 = arith.constant 0 : i32
    %c0_i32_1 = arith.constant 0 : i32
    return %arg0, %c0_i32, %c0_i32_0 : i32, i32, i32
  }
  func.func @transform_1(%arg0: i32) -> (i32, i32) {
    %c0_i32 = arith.constant 0 : i32
    %c0_i32_0 = arith.constant 0 : i32
    %c0_i32_1 = arith.constant 0 : i32
    return %c0_i32, %c0_i32_0 : i32, i32
  }
  func.func @transform_2(%arg0: i32) -> (i32, i32) {
    %c0_i32 = arith.constant 0 : i32
    %c0_i32_0 = arith.constant 0 : i32
    %c0_i32_1 = arith.constant 0 : i32
    return %c0_i32, %c0_i32_0 : i32, i32
  }
  func.func @transform_3(%arg0: i32) -> (i32, i32) {
    %c0_i32 = arith.constant 0 : i32
    %c0_i32_0 = arith.constant 0 : i32
    %c0_i32_1 = arith.constant 0 : i32
    return %c0_i32, %c0_i32_0 : i32, i32
  }
  func.func @transform_4(%arg0: i32) -> (i32, i32) {
    %c0_i32 = arith.constant 0 : i32
    %c0_i32_0 = arith.constant 0 : i32
    %c0_i32_1 = arith.constant 0 : i32
    return %c0_i32, %c0_i32_0 : i32, i32
  }
  func.func @transform_5(%arg0: i32) -> (i32, i32) {
    %c0_i32 = arith.constant 0 : i32
    %c0_i32_0 = arith.constant 0 : i32
    %c0_i32_1 = arith.constant 0 : i32
    return %c0_i32, %c0_i32_0 : i32, i32
  }
  func.func @transform_6(%arg0: i32) -> (i32, i32) {
    %c0_i32 = arith.constant 0 : i32
    %c0_i32_0 = arith.constant 0 : i32
    %c0_i32_1 = arith.constant 0 : i32
    return %c0_i32, %c0_i32_0 : i32, i32
  }
  func.func @transform_7(%arg0: i32) -> (i32, i32) {
    %c0_i32 = arith.constant 0 : i32
    %c0_i32_0 = arith.constant 0 : i32
    %c0_i32_1 = arith.constant 0 : i32
    return %c0_i32, %c0_i32_0 : i32, i32
  }
  func.func @transform_8(%arg0: i32) -> (i32, i32) {
    %c0_i32 = arith.constant 0 : i32
    %c0_i32_0 = arith.constant 0 : i32
    %c0_i32_1 = arith.constant 0 : i32
    return %c0_i32, %c0_i32_0 : i32, i32
  }
  func.func @transform_9(%arg0: i32) -> (i32, i32) {
    %c0_i32 = arith.constant 0 : i32
    %c0_i32_0 = arith.constant 0 : i32
    %c0_i32_1 = arith.constant 0 : i32
    return %c0_i32, %c0_i32_0 : i32, i32
  }
  func.func @transform_10(%arg0: i32) -> (i32, i32) {
    %c0_i32 = arith.constant 0 : i32
    %c0_i32_0 = arith.constant 0 : i32
    %c0_i32_1 = arith.constant 0 : i32
    return %c0_i32, %c0_i32_0 : i32, i32
  }
  func.func @transform_11(%arg0: i32) -> (i32, i32) {
    %c0_i32 = arith.constant 0 : i32
    %c0_i32_0 = arith.constant 0 : i32
    %c0_i32_1 = arith.constant 0 : i32
    return %c0_i32, %c0_i32_0 : i32, i32
  }
  func.func @transform_12(%arg0: i32) -> (i32, i32, i32) {
    %c0_i32 = arith.constant 0 : i32
    %c0_i32_0 = arith.constant 0 : i32
    %c0_i32_1 = arith.constant 0 : i32
    return %arg0, %c0_i32, %c0_i32_0 : i32, i32, i32
  }
}

</mosaic_0001>

<bundles_post_ra>
// kernel: tpu_custom_call.1
= control target key start
LH: loop header
LB: loop body
LE: loop exit
PB: predicated region body
PF: predicated region fallthrough
CT: control target
= control target key end

     0   :  { %vm47_vm0 = vcmask 523264   ;;  %s3226_s0 = inlined_call_operand.vmem [shape: f32[2,8,64], index: 0, kind: input, shape index: {}]   ;;  %s3227_s1 = inlined_call_operand.vmem [shape: bf16[64,288], index: 1, kind: input, shape index: {}]   ;;  %s3228_s2 = inlined_call_operand.vmem [shape: bf16[96,64], index: 2, kind: input, shape index: {}]   ;;  %s3229_s3 = inlined_call_operand.vmem [shape: f32[1,64], index: 3, kind: input, shape index: {}]   ;;  %s3230_s4 = inlined_call_operand.vmem [shape: f32[1,64], index: 4, kind: input, shape index: {}]   ;;  %s3231_s5 = inlined_call_operand.vmem [shape: f32[1,64], index: 5, kind: input, shape index: {}]   ;;  %s3232_s6 = inlined_call_operand.vmem [shape: f32[1,64], index: 6, kind: input, shape index: {}]   ;;  %s3233_s7 = inlined_call_operand.vmem [shape: f32[1,64], index: 7, kind: input, shape index: {}]   ;;  %s3234_s8 = inlined_call_operand.vmem [shape: bf16[64,256], index: 8, kind: input, shape index: {}]   ;;  %s3235_s9 = inlined_call_operand.vmem [shape: f32[1,256], index: 9, kind: input, shape index: {}]   ;;  %s3236_s10 = inlined_call_operand.vmem [shape: bf16[256,64], index: 10, kind: input, shape index: {}]   ;;  %s3237_s11 = inlined_call_operand.vmem [shape: f32[1,64], index: 11, kind: input, shape index: {}]   ;;  %s3238_s12 = inlined_call_operand.hbm [shape: f32[2,8,64], index: 12, kind: output, shape index: {}]  }
   0x1   :  { %v43_v0 = vld [vmem:[%s3226_s0] sm:$0xff]  ;;  %v44_v1 = vld [vmem:[%s3226_s0 + $0x8] sm:$0xff] }
   0x2   :  { %v48_v2 = vsel %vm47_vm0, %v43_v0, 0.0  ;;  %v51_v3 = vsel %vm47_vm0, %v44_v1, 0.0 }
   0x3   :  { %49 = vadd.xlane.f32.xlu0 %v48_v2 }
   0x7   :  { %52 = vadd.xlane.f32.xlu0 %v51_v3 }
   0x8   :  { %17 = vsyncpa [#allocation3], 0  ;;  %v2510_v14 = vld [vmem:[%s3227_s1 + $0x4] ss:$12 sps:$4 sm:$0xff]   ;;  %v2512_v15 = vld [vmem:[%s3227_s1] ss:$12 sps:$4 sm:$0xff]   ;;  %v259_v59 = vlaneseq }
   0x9   :  { %175 = vmatprep.subr.bf16.mxu0 %v2510_v14  ;;  %v2513_v16 = vld [vmem:[%s3227_s1 + $0x1c] ss:$12 sps:$4 sm:$0xff]   ;;  %v2515_v17 = vld [vmem:[%s3227_s1 + $0x18] ss:$12 sps:$4 sm:$0xff]   ;;  %v2516_v18 = vld [vmem:[%s3227_s1 + $0x34] ss:$12 sps:$4 sm:$0xff]  }
   0xa   :  { %176 = vmatpush1.bf16.msra.mxu0 %v2512_v15  ;;  %v2518_v19 = vld [vmem:[%s3227_s1 + $0x30] ss:$12 sps:$4 sm:$0xff]   ;;  %v2519_v20 = vld [vmem:[%s3227_s1 + $0x4c] ss:$12 sps:$4 sm:$0xff]   ;;  %v2521_v21 = vld [vmem:[%s3227_s1 + $0x48] ss:$12 sps:$4 sm:$0xff]  }
   0xb   :  { %177 = vmatprep.subr.bf16.mxu0 %v2513_v16  ;;  %v2642_v22 = vmov 0   ;;  %v2643_v23 = vmov 0.0   ;;  %vm2644_vm1 = vmmov 0   ;;  %v2129_v32 = vld [vmem:[%s3230_s4] ss:$0 sm:$0xff]  ;;  %s2645_s15 = smov 32  }
   0xc   :  { %207 = vmatprep.mubr.bf16.mxu0 %v2642_v22  ;;  %2317 = vmatprep.subr.bf16.mxu1 %v2643_v23  ;;  %v2130_v36 = vld [vmem:[%s3231_s5] ss:$0 sm:$0xff]  ;;  %v2522_v40 = vld [vmem:[%s3227_s1 + $0x8] ss:$12 sps:$4 sm:$0xff]   ;;  %v2524_v43 = vld [vmem:[%s3227_s1 + $0x38] ss:$12 sps:$4 sm:$0xff]  }
   0xd   :  { %2319 = vmatprep.mubr.msk.bf16.mxu1 %vm2644_vm1, %v2643_v23  ;;  %v2523_v42 = vld [vmem:[%s3227_s1 + $0x20] ss:$12 sps:$4 sm:$0xff]   ;;  %v2525_v44 = vld [vmem:[%s3227_s1 + $0x50] ss:$12 sps:$4 sm:$0xff]   ;;  %vm277_vm2 = vcmask 130048   ;;  %v2814_v60 = vshrl.u32 %v259_v59, 7 }
   0xe   :  { %178 = vmatpush1.bf16.msra.mxu0 %v2515_v17  ;;  %v262_v61 = vand.u32 127, %v259_v59  ;;  %v2646_v63 = vmov -1e+30   ;;  %vm376_vm4 = vcmask 64512   ;;  %s2647_s1 = smov 64   ;;  %s2648_s16 = smov 16  }
   0xf   :  { %179 = vmatprep.subr.bf16.mxu0 %v2516_v18  ;;  %vm407_vm5 = vcmask 1043456   ;;  %s2649_s17 = smov 112   ;;  %s2650_s18 = smov 48   ;;  %vm1660_vm6 = vcmask 261120   ;;  %vm1663_vm7 = vcmask 392192   ;;  %vm1668_vm8 = vcmask 654336  }
  0x10   :  { %vm263_vm3 = vcmp.le.s32.totalorder %v262_v61, %v2814_v60  ;;  %s2651_s19 = smov 96   ;;  %s2652_s20 = smov 80   ;;  %vm1720_vm9 = vcmask 785408  }
  0x12   :  { %180 = vmatpush1.bf16.msra.mxu0 %v2518_v19 }
  0x13   :  { %181 = vmatprep.subr.bf16.mxu0 %v2519_v20 }
  0x16   :  { %182 = vmatpush1.bf16.msra.mxu0 %v2521_v21 }
  0x17   :  { %2299 = vmatprep.subr.bf16.mxu0 %v2643_v23 }
  0x90   :  { %v50_v4 = vpop.xlane.xlu0 %49 }
  0x91   :  { %v55_v5 = vmul.f32 0.015625, %v50_v4 }
  0x93   :  { %v57_v6 = vsub.f32 %v43_v0, %v55_v5  ;;  %v2817_v0 = vsel %vm263_vm3, 0.0, %v2646_v63 }
  0x94   :  { %v53_v7 = vpop.xlane.xlu0 %52 }
  0x95   :  { %v56_v8 = vmul.f32 0.015625, %v53_v7  ;;  %v59_v9 = vmul.f32 %v57_v6, %v57_v6 }
  0x97   :  { %v58_v10 = vsub.f32 %v44_v1, %v56_v8  ;;  %v61_v11 = vsel %vm47_vm0, %v59_v9, 0.0 }
  0x98   :  { %62 = vadd.xlane.f32.xlu1 %v61_v11 }
  0x99   :  { %v60_v12 = vmul.f32 %v58_v10, %v58_v10 }
  0x9b   :  { %v64_v13 = vsel %vm47_vm0, %v60_v12, 0.0 }
  0x9c   :  { %65 = vadd.xlane.f32.xlu1 %v64_v13 }
 0x125   :  { %v63_v24 = vpop.xlane.xlu1 %62 }
 0x126   :  { %v67_v25 = vmul.f32 0.015625, %v63_v24 }
 0x128   :  { %v69_v26 = vadd.f32 1e-05, %v67_v25 }
 0x129   :  { %v66_v27 = vpop.xlane.xlu1 %65 }
 0x12a   :  { %2560 = vrsqrt.f32 %v69_v26  ;;  %v68_v28 = vmul.f32 0.015625, %v66_v27 }
 0x12c   :  { %v70_v29 = vadd.f32 1e-05, %v68_v28 }
 0x12e   :  { %2562 = vrsqrt.f32 %v70_v29 }
 0x134   :  { %v2561_v30 = vpop.eup %2560 }
 0x135   :  { %v73_v31 = vmul.f32 %v2561_v30, %v57_v6 }
 0x137   :  { %v81_v35 = vmul.f32 %v2129_v32, %v73_v31 }
 0x138   :  { %v2563_v33 = vpop.eup %2562 }
 0x139   :  { %v74_v34 = vmul.f32 %v2563_v33, %v58_v10  ;;  %v89_v38 = vadd.f32 %v2130_v36, %v81_v35 }
 0x13b   :  { %v82_v37 = vmul.f32 %v2129_v32, %v74_v34 }
 0x13d   :  { %v90_v39 = vadd.f32 %v2130_v36, %v82_v37 }
 0x13f   :  { %v91_v41 = vpack.c.bf16 %v90_v39, %v89_v38 }
 0x141   :  { %2143 = vmatmul.mubr.msk.bf16.vlgmr.msra.gmra.mrb[0].mxu0 %vm47_vm0, %v91_v41 }
 0x142   :  { %2300 = vmatpush3.bf16.msra.mxu0 %v2522_v40  ;;  %2307 = vmatprep.mubr.msk.bf16.mxu0 %vm2644_vm1, %v2643_v23 }
 0x143   :  { %2301 = vmatprep.subr.bf16.mxu0 %v2643_v23 }
 0x146   :  { %2302 = vmatpush3.bf16.msra.mxu0 %v2523_v42 }
 0x147   :  { %2303 = vmatprep.subr.bf16.mxu0 %v2643_v23 }
 0x14a   :  { %2304 = vmatpush3.bf16.msra.mxu0 %v2524_v43 }
 0x14b   :  { %2305 = vmatprep.subr.bf16.mxu0 %v2643_v23 }
 0x14e   :  { %2306 = vmatpush3.bf16.msra.mxu0 %v2525_v44 }
 0x14f   :  { %2311 = vmatprep.subr.bf16.mxu0 %v2643_v23 }
 0x151   :  { %2308 = vmatmul.mubr.msk.bf16.vlgmr.msra.gmra.mrb[4].mxu0 %vm47_vm0, %v91_v41 }
 0x152   :  { %2313 = vmatprep.mubr.msk.bf16.mxu0 %vm2644_vm1, %v2643_v23 }
 0x214   :  { %v209_v45 = vpop.f32.mrb[0].mxu0 }
 0x215   :  { %v2788_v46 = vpack.c.bf16 %v209_v45, %v209_v45  ;;  %v2790_v47 = vpop.f32.mrb[1].mxu0 }
 0x216   :  { %v213_v48 = vpop.f32.mrb[2].mxu0  ;;  %v2837_v29 = vpack.c.bf16 %v2790_v47, %v2790_v47 }
 0x217   :  { %v2792_v49 = vpack.c.bf16 %v213_v48, %v213_v48  ;;  %275 = vrot.lane.b32.xlu0 %v2788_v46, %s2645_s15  ;;  %v215_v50 = vpop.f32.mrb[3].mxu0 }
 0x218   :  { %v2823_v14 = vpack.c.bf16 %v215_v50, %v215_v50 }
 0x219   :  { %324 = vrot.lane.b32.xlu1 %v2792_v49, %s2645_s15 }
 0x224   :  { %v2798_v51 = vpop.f32.mrb[4].mxu0 }
 0x225   :  { %v2309_v52 = vpop.f32.mrb[5].mxu0 }
 0x226   :  { %v2800_v53 = vpop.f32.mrb[6].mxu0 }
 0x227   :  { %v2310_v54 = vpop.f32.mrb[7].mxu0 }
 0x289   :  { %v276_v55 = vpop.permute.xlu0 %275 }
 0x28a   :  { %v282_v56 = vsel %vm277_vm2, %v276_v55, 0 }
 0x28b   :  { %2312 = vmatpush3.bf16.xpose.msra.mxu0 %v282_v56  ;;  %v325_v57 = vpop.permute.xlu1 %324 }
 0x28c   :  { %v330_v58 = vsel %vm277_vm2, %v325_v57, 0  ;;  %2323 = vmatprep.subr.bf16.mxu0 %v2643_v23 }
 0x28d   :  { %2318 = vmatpush3.bf16.xpose.msra.mxu1 %v330_v58 }
 0x28e   :  { %2329 = vmatprep.subr.bf16.mxu1 %v2643_v23 }
 0x292   :  { %2314 = vmatmul.mubr.msk.bf16.vlgmr.msra.gmra.mrb[8].mxu0 %vm277_vm2, %v2788_v46 }
 0x293   :  { %2325 = vmatprep.mubr.msk.bf16.mxu0 %vm2644_vm1, %v2643_v23 }
 0x294   :  { %2320 = vmatmul.mubr.msk.bf16.vlgmr.msra.gmra.mrb[0].mxu1 %vm277_vm2, %v2792_v49 }
 0x295   :  { %2331 = vmatprep.mubr.msk.bf16.mxu1 %vm2644_vm1, %v2643_v23 }
 0x365   :  { %v318_v62 = vpop.f32.mrb[8].mxu0 }
 0x366   :  { %v372_v1 = vmul.f32 0.31622776, %v318_v62  ;;  %v2315_v2 = vpop.f32.mrb[9].mxu0 }
 0x367   :  { %v321_v3 = vpop.f32.mrb[10].mxu0  ;;  %v366_v4 = vpop.f32.mrb[0].mxu1 }
 0x368   :  { %v373_v5 = vmul.f32 0.31622776, %v366_v4  ;;  %v2316_v6 = vpop.f32.mrb[11].mxu0  ;;  %v2321_v7 = vpop.f32.mrb[1].mxu1  ;;  %v374_v8 = vadd.f32 %v372_v1, %v2817_v0 }
 0x369   :  { %v369_v9 = vpop.f32.mrb[2].mxu1 }
 0x36a   :  { %v2322_v10 = vpop.f32.mrb[3].mxu1  ;;  %v377_v11 = vsel %vm376_vm4, %v374_v8, -inf  ;;  %v375_v12 = vadd.f32 %v373_v5, %v2817_v0 }
 0x36b   :  { %378 = vmax.xlane.f32.xlu1 %v377_v11 }
 0x36c   :  { %v380_v13 = vsel %vm376_vm4, %v375_v12, -inf }
 0x36d   :  { %381 = vmax.xlane.f32.xlu0 %v380_v13 }
 0x37c   :  { %452 = vrot.lane.b32.xlu1 %v2823_v14, %s2647_s1 }
 0x380   :  { %502 = vrot.lane.b32.xlu1 %v2788_v46, %s2648_s16 }
 0x3f8   :  { %v379_v15 = vpop.xlane.xlu1 %378 }
 0x3f9   :  { %v383_v16 = vsub.f32 %v374_v8, %v379_v15 }
 0x3fa   :  { %v382_v17 = vpop.xlane.xlu0 %381 }
 0x3fb   :  { %v385_v18 = vmul.f32 1.442695, %v383_v16  ;;  %v384_v19 = vsub.f32 %v375_v12, %v382_v17 }
 0x3fc   :  { %v453_v20 = vpop.permute.xlu1 %452 }
 0x3fd   :  { %2564 = vpow2.f32 %v385_v18  ;;  %v387_v21 = vmul.f32 1.442695, %v384_v19  ;;  %v458_v24 = vsel %vm407_vm5, %v453_v20, 0 }
 0x3fe   :  { %2330 = vmatpush3.bf16.msra.mxu1 %v458_v24 }
 0x3ff   :  { %2566 = vpow2.f32 %v387_v21  ;;  %2341 = vmatprep.subr.bf16.mxu1 %v2643_v23 }
 0x400   :  { %v503_v30 = vpop.permute.xlu1 %502 }
 0x401   :  { %v508_v41 = vsel %vm277_vm2, %v503_v30, 0 }
 0x407   :  { %v2565_v25 = vpop.eup %2564 }
 0x408   :  { %v389_v26 = vsel %vm376_vm4, %v2565_v25, 0.0 }
 0x409   :  { %v2567_v27 = vpop.eup %2566  ;;  %390 = vadd.xlane.f32.xlu0 %v389_v26 }
 0x40a   :  { %v392_v28 = vsel %vm376_vm4, %v2567_v27, 0.0 }
 0x40b   :  { %393 = vadd.xlane.f32.xlu1 %v392_v28 }
 0x41c   :  { %552 = vrot.lane.b32.xlu1 %v2792_v49, %s2648_s16 }
 0x41f   :  { %402 = vrot.lane.b32.xlu0 %v2837_v29, %s2647_s1 }
 0x420   :  { %550 = vrot.lane.b32.xlu1 %v2792_v49, %s2649_s17 }
 0x423   :  { %500 = vrot.lane.b32.xlu0 %v2788_v46, %s2649_s17 }
 0x496   :  { %v391_v31 = vpop.xlane.xlu0 %390 }
 0x497   :  { %2568 = vrcp.f32 %v391_v31 }
 0x498   :  { %v394_v32 = vpop.xlane.xlu1 %393 }
 0x499   :  { %2570 = vrcp.f32 %v394_v32 }
 0x49a   :  { %v403_v33 = vpop.permute.xlu0 %402 }
 0x49b   :  { %v409_v34 = vsel %vm407_vm5, %v403_v33, 0 }
 0x49c   :  { %2324 = vmatpush3.bf16.msra.mxu0 %v409_v34  ;;  %v553_v40 = vpop.permute.xlu1 %552 }
 0x49d   :  { %2335 = vmatprep.subr.bf16.mxu0 %v2643_v23  ;;  %v558_v43 = vsel %vm277_vm2, %v553_v40, 0 }
 0x49e   :  { %v501_v44 = vpop.permute.xlu0 %500 }
 0x4a0   :  { %v551_v45 = vpop.permute.xlu1 %550 }
 0x4a1   :  { %v2569_v35 = vpop.eup %2568 }
 0x4a2   :  { %v397_v36 = vmul.f32 %v2569_v35, %v2565_v25  ;;  %v730_v35 = vsel %vm277_vm2, %v2837_v29, 0 }
 0x4a3   :  { %v2571_v37 = vpop.eup %2570 }
 0x4a4   :  { %v398_v38 = vmul.f32 %v2571_v37, %v2567_v27  ;;  %v399_v39 = vpack.c.bf16 %v397_v36, %v397_v36  ;;  %v778_v37 = vsel %vm277_vm2, %v2823_v14, 0 }
 0x4a6   :  { %2326 = vmatmul.mubr.msk.bf16.vlgmr.msra.gmra.mrb[12].mxu0 %vm376_vm4, %v399_v39  ;;  %v400_v42 = vpack.c.bf16 %v398_v38, %v398_v38 }
 0x4a7   :  { %2336 = vmatpush3.bf16.xpose.msra.mxu0 %v508_v41  ;;  %2337 = vmatprep.mubr.msk.bf16.mxu0 %vm2644_vm1, %v2643_v23 }
 0x4a8   :  { %2332 = vmatmul.mubr.msk.bf16.vlgmr.msra.gmra.mrb[4].mxu1 %vm376_vm4, %v400_v42  ;;  %2347 = vmatprep.subr.bf16.mxu0 %v2643_v23 }
 0x4a9   :  { %2342 = vmatpush3.bf16.xpose.msra.mxu1 %v558_v43  ;;  %2343 = vmatprep.mubr.msk.bf16.mxu1 %vm2644_vm1, %v2643_v23 }
 0x4aa   :  { %2353 = vmatprep.subr.bf16.mxu1 %v2643_v23 }
 0x4ae   :  { %2338 = vmatmul.mubr.msk.bf16.vlgmr.msra.gmra.mrb[16].mxu0 %vm277_vm2, %v501_v44 }
 0x4af   :  { %2349 = vmatprep.mubr.msk.bf16.mxu0 %vm2644_vm1, %v2643_v23 }
 0x4b0   :  { %2344 = vmatmul.mubr.msk.bf16.vlgmr.msra.gmra.mrb[8].mxu1 %vm277_vm2, %v551_v45 }
 0x4b1   :  { %2355 = vmatprep.mubr.msk.bf16.mxu1 %vm2644_vm1, %v2643_v23 }
 0x579   :  { %v2863_v47 = vpop.f32.mrb[12].mxu0 }
 0x57a   :  { %v2327_v48 = vpop.f32.mrb[13].mxu0 }
 0x57b   :  { %v448_v50 = vpop.f32.mrb[14].mxu0  ;;  %v2865_v52 = vpop.f32.mrb[4].mxu1 }
 0x57c   :  { %v2328_v54 = vpop.f32.mrb[15].mxu0  ;;  %v2333_v55 = vpop.f32.mrb[5].mxu1 }
 0x57d   :  { %v497_v56 = vpop.f32.mrb[6].mxu1 }
 0x57e   :  { %v2334_v57 = vpop.f32.mrb[7].mxu1 }
 0x581   :  { %v544_v58 = vpop.f32.mrb[16].mxu0 }
 0x582   :  { %v600_v59 = vmul.f32 0.31622776, %v544_v58  ;;  %v2339_v61 = vpop.f32.mrb[17].mxu0 }
 0x583   :  { %v547_v62 = vpop.f32.mrb[18].mxu0  ;;  %v594_v63 = vpop.f32.mrb[8].mxu1 }
 0x584   :  { %v601_v1 = vmul.f32 0.31622776, %v594_v63  ;;  %v2340_v2 = vpop.f32.mrb[19].mxu0  ;;  %v2345_v3 = vpop.f32.mrb[9].mxu1  ;;  %v602_v4 = vadd.f32 %v600_v59, %v2817_v0 }
 0x585   :  { %v597_v5 = vpop.f32.mrb[10].mxu1 }
 0x586   :  { %v2346_v6 = vpop.f32.mrb[11].mxu1  ;;  %v604_v7 = vsel %vm376_vm4, %v602_v4, -inf  ;;  %v603_v8 = vadd.f32 %v601_v1, %v2817_v0 }
 0x587   :  { %605 = vmax.xlane.f32.xlu0 %v604_v7 }
 0x588   :  { %v607_v9 = vsel %vm376_vm4, %v603_v8, -inf }
 0x589   :  { %608 = vmax.xlane.f32.xlu1 %v607_v9 }
 0x59a   :  { %676 = vrot.lane.b32.xlu1 %v2823_v14, %s2650_s18 }
 0x59e   :  { %724 = vrot.lane.b32.xlu1 %v2788_v46, %s2651_s19 }
 0x5a2   :  { %772 = vrot.lane.b32.xlu1 %v2792_v49, %s2651_s19 }
 0x614   :  { %v606_v10 = vpop.xlane.xlu0 %605 }
 0x615   :  { %v610_v11 = vsub.f32 %v602_v4, %v606_v10 }
 0x616   :  { %v609_v12 = vpop.xlane.xlu1 %608 }
 0x617   :  { %v612_v13 = vmul.f32 1.442695, %v610_v11  ;;  %v611_v15 = vsub.f32 %v603_v8, %v609_v12 }
 0x619   :  { %2572 = vpow2.f32 %v612_v13  ;;  %v614_v16 = vmul.f32 1.442695, %v611_v15 }
 0x61a   :  { %v677_v17 = vpop.permute.xlu1 %676 }
 0x61b   :  { %2574 = vpow2.f32 %v614_v16  ;;  %v682_v18 = vsel %vm407_vm5, %v677_v17, 0 }
 0x61c   :  { %2354 = vmatpush3.bf16.msra.mxu1 %v682_v18 }
 0x61d   :  { %2365 = vmatprep.subr.bf16.mxu1 %v2643_v23 }
 0x61e   :  { %v725_v38 = vpop.permute.xlu1 %724 }
 0x622   :  { %v773_v39 = vpop.permute.xlu1 %772 }
 0x623   :  { %v2573_v19 = vpop.eup %2572 }
 0x624   :  { %v616_v20 = vsel %vm376_vm4, %v2573_v19, 0.0 }
 0x625   :  { %v2575_v21 = vpop.eup %2574  ;;  %617 = vadd.xlane.f32.xlu0 %v616_v20 }
 0x626   :  { %v619_v24 = vsel %vm376_vm4, %v2575_v21, 0.0 }
 0x629   :  { %620 = vadd.xlane.f32.xlu0 %v619_v24 }
 0x63f   :  { %628 = vrot.lane.b32.xlu0 %v2837_v29, %s2650_s18 }
 0x6b2   :  { %v618_v25 = vpop.xlane.xlu0 %617 }
 0x6b3   :  { %2576 = vrcp.f32 %v618_v25 }
 0x6b6   :  { %v621_v26 = vpop.xlane.xlu0 %620 }
 0x6b7   :  { %2578 = vrcp.f32 %v621_v26 }
 0x6ba   :  { %v629_v27 = vpop.permute.xlu0 %628 }
 0x6bb   :  { %v634_v28 = vsel %vm407_vm5, %v629_v27, 0 }
 0x6bc   :  { %2348 = vmatpush3.bf16.msra.mxu0 %v634_v28 }
 0x6bd   :  { %v2577_v30 = vpop.eup %2576  ;;  %2359 = vmatprep.subr.bf16.mxu0 %v2643_v23 }
 0x6be   :  { %v624_v31 = vmul.f32 %v2577_v30, %v2573_v19 }
 0x6c0   :  { %v626_v32 = vpack.c.bf16 %v624_v31, %v624_v31 }
 0x6c1   :  { %v2579_v33 = vpop.eup %2578 }
 0x6c2   :  { %v625_v34 = vmul.f32 %v2579_v33, %v2575_v21  ;;  %2350 = vmatmul.mubr.msk.bf16.vlgmr.msra.gmra.mrb[20].mxu0 %vm376_vm4, %v626_v32 }
 0x6c3   :  { %2361 = vmatprep.mubr.msk.bf16.mxu0 %vm2644_vm1, %v2643_v23 }
 0x6c4   :  { %v627_v36 = vpack.c.bf16 %v625_v34, %v625_v34 }
 0x6c5   :  { %2360 = vmatpush3.bf16.xpose.msra.mxu0 %v730_v35 }
 0x6c6   :  { %2356 = vmatmul.mubr.msk.bf16.vlgmr.msra.gmra.mrb[12].mxu1 %vm376_vm4, %v627_v36  ;;  %2371 = vmatprep.subr.bf16.mxu0 %v2643_v23 }
 0x6c7   :  { %2366 = vmatpush3.bf16.xpose.msra.mxu1 %v778_v37  ;;  %2367 = vmatprep.mubr.msk.bf16.mxu1 %vm2644_vm1, %v2643_v23 }
 0x6c8   :  { %2377 = vmatprep.subr.bf16.mxu1 %v2643_v23 }
 0x6cc   :  { %2362 = vmatmul.mubr.msk.bf16.vlgmr.msra.gmra.mrb[24].mxu0 %vm277_vm2, %v725_v38 }
 0x6cd   :  { %2373 = vmatprep.mubr.msk.bf16.mxu0 %vm2644_vm1, %v2643_v23 }
 0x6ce   :  { %2368 = vmatmul.mubr.msk.bf16.vlgmr.msra.gmra.mrb[16].mxu1 %vm277_vm2, %v773_v39 }
 0x6cf   :  { %2379 = vmatprep.mubr.msk.bf16.mxu1 %vm2644_vm1, %v2643_v23 }
 0x795   :  { %v2903_v40 = vpop.f32.mrb[20].mxu0 }
 0x796   :  { %v2351_v41 = vpop.f32.mrb[21].mxu0 }
 0x797   :  { %v673_v42 = vpop.f32.mrb[22].mxu0 }
 0x798   :  { %v2352_v43 = vpop.f32.mrb[23].mxu0 }
 0x799   :  { %v2905_v44 = vpop.f32.mrb[12].mxu1 }
 0x79a   :  { %v2485_v45 = vpack.i.bf16 %v2905_v44, %v2903_v40  ;;  %v2357_v48 = vpop.f32.mrb[13].mxu1 }
 0x79b   :  { %v721_v50 = vpop.f32.mrb[14].mxu1 }
 0x79c   :  { %v2358_v54 = vpop.f32.mrb[15].mxu1 }
 0x79f   :  { %v766_v55 = vpop.f32.mrb[24].mxu0 }
 0x7a0   :  { %v820_v56 = vmul.f32 0.31622776, %v766_v55  ;;  %v2363_v57 = vpop.f32.mrb[25].mxu0 }
 0x7a1   :  { %v769_v58 = vpop.f32.mrb[26].mxu0  ;;  %v814_v59 = vpop.f32.mrb[16].mxu1 }
 0x7a2   :  { %v821_v61 = vmul.f32 0.31622776, %v814_v59  ;;  %v2364_v62 = vpop.f32.mrb[27].mxu0  ;;  %v2369_v63 = vpop.f32.mrb[17].mxu1  ;;  %v822_v1 = vadd.f32 %v820_v56, %v2817_v0 }
 0x7a3   :  { %v817_v2 = vpop.f32.mrb[18].mxu1 }
 0x7a4   :  { %v2370_v3 = vpop.f32.mrb[19].mxu1  ;;  %v824_v4 = vsel %vm376_vm4, %v822_v1, -inf  ;;  %v823_v5 = vadd.f32 %v821_v61, %v2817_v0 }
 0x7a5   :  { %825 = vmax.xlane.f32.xlu0 %v824_v4 }
 0x7a6   :  { %v827_v6 = vsel %vm376_vm4, %v823_v5, -inf }
 0x7a7   :  { %828 = vmax.xlane.f32.xlu1 %v827_v6 }
 0x7b8   :  { %896 = vrot.lane.b32.xlu1 %v2823_v14, %s2645_s15 }
 0x7bc   :  { %946 = vrot.lane.b32.xlu1 %v2837_v29, %s2649_s17 }
 0x7c0   :  { %996 = vrot.lane.b32.xlu1 %v2823_v14, %s2649_s17 }
 0x7c4   :  { %994 = vrot.lane.b32.xlu1 %v2792_v49, %s2652_s20 }
 0x832   :  { %v826_v7 = vpop.xlane.xlu0 %825 }
 0x833   :  { %v830_v8 = vsub.f32 %v822_v1, %v826_v7 }
 0x834   :  { %v829_v9 = vpop.xlane.xlu1 %828 }
 0x835   :  { %v832_v10 = vmul.f32 1.442695, %v830_v8  ;;  %v831_v11 = vsub.f32 %v823_v5, %v829_v9 }
 0x837   :  { %2580 = vpow2.f32 %v832_v10  ;;  %v834_v12 = vmul.f32 1.442695, %v831_v11 }
 0x838   :  { %v897_v13 = vpop.permute.xlu1 %896 }
 0x839   :  { %2582 = vpow2.f32 %v834_v12  ;;  %v902_v15 = vsel %vm407_vm5, %v897_v13, 0 }
 0x83a   :  { %2378 = vmatpush3.bf16.msra.mxu1 %v902_v15 }
 0x83b   :  { %2389 = vmatprep.subr.bf16.mxu1 %v2643_v23 }
 0x83c   :  { %v947_v27 = vpop.permute.xlu1 %946 }
 0x83d   :  { %v952_v34 = vsel %vm277_vm2, %v947_v27, 0 }
 0x840   :  { %v997_v33 = vpop.permute.xlu1 %996 }
 0x841   :  { %v2581_v16 = vpop.eup %2580  ;;  %v1002_v36 = vsel %vm277_vm2, %v997_v33, 0 }
 0x842   :  { %v836_v17 = vsel %vm376_vm4, %v2581_v16, 0.0 }
 0x843   :  { %v2583_v18 = vpop.eup %2582  ;;  %837 = vadd.xlane.f32.xlu0 %v836_v17 }
 0x844   :  { %v839_v19 = vsel %vm376_vm4, %v2583_v18, 0.0  ;;  %v995_v38 = vpop.permute.xlu1 %994 }
 0x847   :  { %840 = vadd.xlane.f32.xlu0 %v839_v19 }
 0x85d   :  { %848 = vrot.lane.b32.xlu0 %v2837_v29, %s2645_s15 }
 0x861   :  { %944 = vrot.lane.b32.xlu0 %v2788_v46, %s2652_s20 }
 0x8d0   :  { %v838_v20 = vpop.xlane.xlu0 %837 }
 0x8d1   :  { %2584 = vrcp.f32 %v838_v20 }
 0x8d4   :  { %v841_v21 = vpop.xlane.xlu0 %840 }
 0x8d5   :  { %2586 = vrcp.f32 %v841_v21 }
 0x8d8   :  { %v849_v24 = vpop.permute.xlu0 %848 }
 0x8d9   :  { %v854_v25 = vsel %vm407_vm5, %v849_v24, 0 }
 0x8da   :  { %2372 = vmatpush3.bf16.msra.mxu0 %v854_v25 }
 0x8db   :  { %v2585_v26 = vpop.eup %2584  ;;  %2383 = vmatprep.subr.bf16.mxu0 %v2643_v23 }
 0x8dc   :  { %v844_v28 = vmul.f32 %v2585_v26, %v2581_v16  ;;  %v945_v37 = vpop.permute.xlu0 %944 }
 0x8de   :  { %v846_v30 = vpack.c.bf16 %v844_v28, %v844_v28 }
 0x8df   :  { %v2587_v31 = vpop.eup %2586 }
 0x8e0   :  { %v845_v32 = vmul.f32 %v2587_v31, %v2583_v18  ;;  %2374 = vmatmul.mubr.msk.bf16.vlgmr.msra.gmra.mrb[28].mxu0 %vm376_vm4, %v846_v30 }
 0x8e1   :  { %2385 = vmatprep.mubr.msk.bf16.mxu0 %vm2644_vm1, %v2643_v23 }
 0x8e2   :  { %v847_v35 = vpack.c.bf16 %v845_v32, %v845_v32 }
 0x8e3   :  { %2384 = vmatpush3.bf16.xpose.msra.mxu0 %v952_v34 }
 0x8e4   :  { %2380 = vmatmul.mubr.msk.bf16.vlgmr.msra.gmra.mrb[20].mxu1 %vm376_vm4, %v847_v35  ;;  %2395 = vmatprep.subr.bf16.mxu0 %v2643_v23 }
 0x8e5   :  { %2390 = vmatpush3.bf16.xpose.msra.mxu1 %v1002_v36  ;;  %2391 = vmatprep.mubr.msk.bf16.mxu1 %vm2644_vm1, %v2643_v23 }
 0x8e6   :  { %2401 = vmatprep.subr.bf16.mxu1 %v2643_v23 }
 0x8ea   :  { %2386 = vmatmul.mubr.msk.bf16.vlgmr.msra.gmra.mrb[32].mxu0 %vm277_vm2, %v945_v37 }
 0x8eb   :  { %2397 = vmatprep.mubr.msk.bf16.mxu0 %vm2644_vm1, %v2643_v23 }
 0x8ec   :  { %2392 = vmatmul.mubr.msk.bf16.vlgmr.msra.gmra.mrb[24].mxu1 %vm277_vm2, %v995_v38 }
 0x8ed   :  { %2403 = vmatprep.mubr.msk.bf16.mxu1 %vm2644_vm1, %v2643_v23 }
 0x9b3   :  { %v2947_v39 = vpop.f32.mrb[28].mxu0 }
 0x9b4   :  { %v2375_v41 = vpop.f32.mrb[29].mxu0 }
 0x9b5   :  { %v893_v42 = vpop.f32.mrb[30].mxu0  ;;  %v2986_v41 = vpack.c.bf16 %v2798_v51, %v2798_v51 }
 0x9b6   :  { %v2376_v43 = vpop.f32.mrb[31].mxu0  ;;  %v2991_v42 = vpack.c.bf16 %v2800_v53, %v2800_v53 }
 0x9b7   :  { %v2949_v48 = vpop.f32.mrb[20].mxu1 }
 0x9b8   :  { %v2490_v50 = vpack.i.bf16 %v2949_v48, %v2947_v39  ;;  %v2381_v54 = vpop.f32.mrb[21].mxu1  ;;  %v1352_v51 = vsel %vm407_vm5, %v2991_v42, 0 }
 0x9b9   :  { %v941_v55 = vpop.f32.mrb[22].mxu1  ;;  %v1306_v54 = vsel %vm407_vm5, %v2986_v41, 0 }
 0x9ba   :  { %v2382_v56 = vpop.f32.mrb[23].mxu1 }
 0x9bd   :  { %v988_v57 = vpop.f32.mrb[32].mxu0 }
 0x9be   :  { %v1044_v58 = vmul.f32 0.31622776, %v988_v57  ;;  %v2387_v59 = vpop.f32.mrb[33].mxu0 }
 0x9bf   :  { %v991_v61 = vpop.f32.mrb[34].mxu0  ;;  %v1038_v62 = vpop.f32.mrb[24].mxu1 }
 0x9c0   :  { %v1045_v63 = vmul.f32 0.31622776, %v1038_v62  ;;  %v2388_v1 = vpop.f32.mrb[35].mxu0  ;;  %v2393_v2 = vpop.f32.mrb[25].mxu1  ;;  %v1046_v3 = vadd.f32 %v1044_v58, %v2817_v0 }
 0x9c1   :  { %v1041_v4 = vpop.f32.mrb[26].mxu1 }
 0x9c2   :  { %v2394_v5 = vpop.f32.mrb[27].mxu1  ;;  %v1048_v6 = vsel %vm376_vm4, %v1046_v3, -inf  ;;  %v1047_v7 = vadd.f32 %v1045_v63, %v2817_v0 }
 0x9c3   :  { %1049 = vmax.xlane.f32.xlu0 %v1048_v6 }
 0x9c4   :  { %v1051_v8 = vsel %vm376_vm4, %v1047_v7, -inf }
 0x9c5   :  { %1052 = vmax.xlane.f32.xlu1 %v1051_v8 }
 0x9d6   :  { %1120 = vrot.lane.b32.xlu1 %v2823_v14, %s2648_s16 }
 0x9da   :  { %1176 = vrot.lane.b32.xlu1 %v2837_v29, %s2651_s19 }
 0x9de   :  { %1226 = vrot.lane.b32.xlu1 %v2823_v14, %s2651_s19 }
 0x9e2   :  { %1224 = vrot.lane.b32.xlu1 %v2792_v49, %s2647_s1 }
 0xa50   :  { %v1050_v9 = vpop.xlane.xlu0 %1049 }
 0xa51   :  { %v1054_v10 = vsub.f32 %v1046_v3, %v1050_v9 }
 0xa52   :  { %v1053_v11 = vpop.xlane.xlu1 %1052 }
 0xa53   :  { %v1056_v12 = vmul.f32 1.442695, %v1054_v10  ;;  %v1055_v13 = vsub.f32 %v1047_v7, %v1053_v11 }
 0xa55   :  { %2588 = vpow2.f32 %v1056_v12  ;;  %v1058_v15 = vmul.f32 1.442695, %v1055_v13 }
 0xa56   :  { %v1121_v16 = vpop.permute.xlu1 %1120 }
 0xa57   :  { %2590 = vpow2.f32 %v1058_v15  ;;  %v1126_v17 = vsel %vm407_vm5, %v1121_v16, 0 }
 0xa58   :  { %2402 = vmatpush3.bf16.msra.mxu1 %v1126_v17 }
 0xa59   :  { %2413 = vmatprep.subr.bf16.mxu1 %v2643_v23 }
 0xa5a   :  { %v1177_v30 = vpop.permute.xlu1 %1176 }
 0xa5b   :  { %v1182_v36 = vsel %vm277_vm2, %v1177_v30, 0 }
 0xa5e   :  { %v1227_v35 = vpop.permute.xlu1 %1226 }
 0xa5f   :  { %v2589_v18 = vpop.eup %2588  ;;  %v1232_v38 = vsel %vm277_vm2, %v1227_v35, 0 }
 0xa60   :  { %v1060_v19 = vsel %vm376_vm4, %v2589_v18, 0.0 }
 0xa61   :  { %v2591_v20 = vpop.eup %2590  ;;  %1061 = vadd.xlane.f32.xlu0 %v1060_v19 }
 0xa62   :  { %v1063_v21 = vsel %vm376_vm4, %v2591_v20, 0.0  ;;  %v1225_v55 = vpop.permute.xlu1 %1224 }
 0xa65   :  { %1064 = vadd.xlane.f32.xlu0 %v1063_v21 }
 0xa7b   :  { %1072 = vrot.lane.b32.xlu0 %v2837_v29, %s2648_s16 }
 0xa7f   :  { %1174 = vrot.lane.b32.xlu0 %v2788_v46, %s2647_s1 }
 0xaee   :  { %v1062_v24 = vpop.xlane.xlu0 %1061 }
 0xaef   :  { %2592 = vrcp.f32 %v1062_v24 }
 0xaf2   :  { %v1065_v25 = vpop.xlane.xlu0 %1064 }
 0xaf3   :  { %2594 = vrcp.f32 %v1065_v25 }
 0xaf6   :  { %v1073_v26 = vpop.permute.xlu0 %1072 }
 0xaf7   :  { %v1078_v27 = vsel %vm407_vm5, %v1073_v26, 0 }
 0xaf8   :  { %2396 = vmatpush3.bf16.msra.mxu0 %v1078_v27 }
 0xaf9   :  { %v2593_v28 = vpop.eup %2592  ;;  %2407 = vmatprep.subr.bf16.mxu0 %v2643_v23 }
 0xafa   :  { %v1068_v31 = vmul.f32 %v2593_v28, %v2589_v18  ;;  %v1175_v43 = vpop.permute.xlu0 %1174 }
 0xafc   :  { %v1070_v32 = vpack.c.bf16 %v1068_v31, %v1068_v31 }
 0xafd   :  { %v2595_v33 = vpop.eup %2594 }
 0xafe   :  { %v1069_v34 = vmul.f32 %v2595_v33, %v2591_v20  ;;  %2398 = vmatmul.mubr.msk.bf16.vlgmr.msra.gmra.mrb[36].mxu0 %vm376_vm4, %v1070_v32 }
 0xaff   :  { %2409 = vmatprep.mubr.msk.bf16.mxu0 %vm2644_vm1, %v2643_v23 }
 0xb00   :  { %v1071_v37 = vpack.c.bf16 %v1069_v34, %v1069_v34 }
 0xb01   :  { %2408 = vmatpush3.bf16.xpose.msra.mxu0 %v1182_v36 }
 0xb02   :  { %2404 = vmatmul.mubr.msk.bf16.vlgmr.msra.gmra.mrb[28].mxu1 %vm376_vm4, %v1071_v37  ;;  %2419 = vmatprep.subr.bf16.mxu0 %v2643_v23 }
 0xb03   :  { %2414 = vmatpush3.bf16.xpose.msra.mxu1 %v1232_v38  ;;  %2415 = vmatprep.mubr.msk.bf16.mxu1 %vm2644_vm1, %v2643_v23 }
 0xb04   :  { %2425 = vmatprep.subr.bf16.mxu1 %v2643_v23 }
 0xb08   :  { %2410 = vmatmul.mubr.msk.bf16.vlgmr.msra.gmra.mrb[40].mxu0 %vm277_vm2, %v1175_v43 }
 0xb09   :  { %2420 = vmatpush3.bf16.msra.mxu0 %v1306_v54  ;;  %2421 = vmatprep.mubr.msk.bf16.mxu0 %vm2644_vm1, %v2643_v23 }
 0xb0a   :  { %2416 = vmatmul.mubr.msk.bf16.vlgmr.msra.gmra.mrb[32].mxu1 %vm277_vm2, %v1225_v55  ;;  %2431 = vmatprep.subr.bf16.mxu0 %v2643_v23 }
 0xb0b   :  { %2426 = vmatpush3.bf16.msra.mxu1 %v1352_v51  ;;  %2427 = vmatprep.mubr.msk.bf16.mxu1 %vm2644_vm1, %v2643_v23 }
 0xb0c   :  { %2437 = vmatprep.subr.bf16.mxu1 %v2643_v23 }
 0xbd1   :  { %v3005_v53 = vpop.f32.mrb[36].mxu0 }
 0xbd2   :  { %v2399_v56 = vpop.f32.mrb[37].mxu0 }
 0xbd3   :  { %v1117_v57 = vpop.f32.mrb[38].mxu0 }
 0xbd4   :  { %v2400_v58 = vpop.f32.mrb[39].mxu0 }
 0xbd5   :  { %v3007_v59 = vpop.f32.mrb[28].mxu1 }
 0xbd6   :  { %v2495_v61 = vpack.i.bf16 %v3007_v59, %v3005_v53  ;;  %v2405_v62 = vpop.f32.mrb[29].mxu1  ;;  %v2526_v59 = vld [vmem:[%s3228_s2] sm:$0xff]  }
 0xbd7   :  { %v1165_v63 = vpop.f32.mrb[30].mxu1 }
 0xbd8   :  { %v2406_v1 = vpop.f32.mrb[31].mxu1 }
 0xbdb   :  { %v1218_v2 = vpop.f32.mrb[40].mxu0 }
 0xbdc   :  { %v1274_v3 = vmul.f32 0.31622776, %v1218_v2  ;;  %v2411_v4 = vpop.f32.mrb[41].mxu0 }
 0xbdd   :  { %v1221_v5 = vpop.f32.mrb[42].mxu0  ;;  %v1268_v6 = vpop.f32.mrb[32].mxu1 }
 0xbde   :  { %v1275_v7 = vmul.f32 0.31622776, %v1268_v6  ;;  %v2412_v8 = vpop.f32.mrb[43].mxu0  ;;  %v2417_v9 = vpop.f32.mrb[33].mxu1  ;;  %v1276_v10 = vadd.f32 %v1274_v3, %v2817_v0 }
 0xbdf   :  { %v1271_v11 = vpop.f32.mrb[34].mxu1 }
 0xbe0   :  { %v2418_v12 = vpop.f32.mrb[35].mxu1  ;;  %v1278_v13 = vsel %vm376_vm4, %v1276_v10, -inf  ;;  %v1277_v15 = vadd.f32 %v1275_v7, %v2817_v0 }
 0xbe1   :  { %1279 = vmax.xlane.f32.xlu0 %v1278_v13 }
 0xbe2   :  { %v1281_v16 = vsel %vm376_vm4, %v1277_v15, -inf }
 0xbe3   :  { %1282 = vmax.xlane.f32.xlu1 %v1281_v16 }
 0xbf4   :  { %1446 = vrot.lane.b32.xlu1 %v2823_v14, %s2652_s20 }
 0xbf8   :  { %1394 = vrot.lane.b32.xlu1 %v2788_v46, %s2650_s18 }
 0xbfc   :  { %1444 = vrot.lane.b32.xlu1 %v2792_v49, %s2650_s18 }
 0xc6e   :  { %v1280_v17 = vpop.xlane.xlu0 %1279 }
 0xc6f   :  { %v1284_v18 = vsub.f32 %v1276_v10, %v1280_v17 }
 0xc70   :  { %v1283_v19 = vpop.xlane.xlu1 %1282 }
 0xc71   :  { %v1286_v20 = vmul.f32 1.442695, %v1284_v18  ;;  %v1285_v21 = vsub.f32 %v1277_v15, %v1283_v19 }
 0xc73   :  { %2596 = vpow2.f32 %v1286_v20  ;;  %v1288_v24 = vmul.f32 1.442695, %v1285_v21 }
 0xc74   :  { %v1447_v34 = vpop.permute.xlu1 %1446 }
 0xc75   :  { %2598 = vpow2.f32 %v1288_v24  ;;  %v1452_v37 = vsel %vm277_vm2, %v1447_v34, 0 }
 0xc78   :  { %v1395_v38 = vpop.permute.xlu1 %1394 }
 0xc7c   :  { %v1445_v43 = vpop.permute.xlu1 %1444 }
 0xc7d   :  { %v2597_v25 = vpop.eup %2596 }
 0xc7e   :  { %v1290_v26 = vsel %vm376_vm4, %v2597_v25, 0.0 }
 0xc7f   :  { %v2599_v27 = vpop.eup %2598  ;;  %1291 = vadd.xlane.f32.xlu0 %v1290_v26 }
 0xc80   :  { %v1293_v14 = vsel %vm376_vm4, %v2599_v27, 0.0 }
 0xc83   :  { %1294 = vadd.xlane.f32.xlu0 %v1293_v14 }
 0xc99   :  { %1396 = vrot.lane.b32.xlu0 %v2837_v29, %s2652_s20 }
 0xd0c   :  { %v1292_v46 = vpop.xlane.xlu0 %1291 }
 0xd0d   :  { %2600 = vrcp.f32 %v1292_v46 }
 0xd10   :  { %v1295_v49 = vpop.xlane.xlu0 %1294 }
 0xd11   :  { %2602 = vrcp.f32 %v1295_v49 }
 0xd14   :  { %v1397_v31 = vpop.permute.xlu0 %1396 }
 0xd15   :  { %v1402_v36 = vsel %vm277_vm2, %v1397_v31, 0  ;;  %v2531_v31 = vld [vmem:[%s3228_s2 + $0x28] sm:$0xff]  }
 0xd17   :  { %v2601_v28 = vpop.eup %2600 }
 0xd18   :  { %v1298_v30 = vmul.f32 %v2601_v28, %v2597_v25  ;;  %v2528_v28 = vld [vmem:[%s3228_s2 + $0x10] sm:$0xff]  }
 0xd1a   :  { %v1300_v32 = vpack.c.bf16 %v1298_v30, %v1298_v30  ;;  %v2530_v30 = vld [vmem:[%s3228_s2 + $0x20] sm:$0xff]  }
 0xd1b   :  { %v2603_v33 = vpop.eup %2602 }
 0xd1c   :  { %v1299_v35 = vmul.f32 %v2603_v33, %v2599_v27  ;;  %2422 = vmatmul.mubr.msk.bf16.vlgmr.msra.gmra.mrb[44].mxu0 %vm376_vm4, %v1300_v32 }
 0xd1d   :  { %2432 = vmatpush3.bf16.xpose.msra.mxu0 %v1402_v36  ;;  %2433 = vmatprep.mubr.msk.bf16.mxu0 %vm2644_vm1, %v2643_v23 }
 0xd1e   :  { %v1301_v29 = vpack.c.bf16 %v1299_v35, %v1299_v35  ;;  %2443 = vmatprep.subr.bf16.mxu0 %v2643_v23 }
 0xd20   :  { %2428 = vmatmul.mubr.msk.bf16.vlgmr.msra.gmra.mrb[36].mxu1 %vm376_vm4, %v1301_v29 }
 0xd21   :  { %2438 = vmatpush3.bf16.xpose.msra.mxu1 %v1452_v37  ;;  %2439 = vmatprep.mubr.msk.bf16.mxu1 %vm2644_vm1, %v2643_v23 }
 0xd22   :  { %2449 = vmatprep.subr.bf16.mxu1 %v2643_v23 }
 0xd24   :  { %2434 = vmatmul.mubr.msk.bf16.vlgmr.msra.gmra.mrb[48].mxu0 %vm277_vm2, %v1395_v38 }
 0xd25   :  { %2445 = vmatprep.mubr.msk.bf16.mxu0 %vm2644_vm1, %v2643_v23 }
 0xd28   :  { %2440 = vmatmul.mubr.msk.bf16.vlgmr.msra.gmra.mrb[40].mxu1 %vm277_vm2, %v1445_v43 }
 0xd29   :  { %2451 = vmatprep.mubr.msk.bf16.mxu1 %vm2644_vm1, %v2643_v23 }
 0xdef   :  { %v1342_v54 = vpop.f32.mrb[44].mxu0 }
 0xdf0   :  { %v2423_v55 = vpop.f32.mrb[45].mxu0 }
 0xdf1   :  { %v1345_v51 = vpop.f32.mrb[46].mxu0 }
 0xdf2   :  { %v2424_v56 = vpop.f32.mrb[47].mxu0 }
 0xdf3   :  { %v1388_v57 = vpop.f32.mrb[36].mxu1 }
 0xdf4   :  { %v2500_v58 = vpack.i.bf16 %v1388_v57, %v1342_v54  ;;  %v2429_v62 = vpop.f32.mrb[37].mxu1 }
 0xdf5   :  { %v1391_v63 = vpop.f32.mrb[38].mxu1 }
 0xdf6   :  { %v2430_v1 = vpop.f32.mrb[39].mxu1 }
 0xdf7   :  { %v1438_v2 = vpop.f32.mrb[48].mxu0 }
 0xdf8   :  { %v1494_v3 = vmul.f32 0.31622776, %v1438_v2  ;;  %v2435_v4 = vpop.f32.mrb[49].mxu0 }
 0xdf9   :  { %v1441_v5 = vpop.f32.mrb[50].mxu0 }
 0xdfa   :  { %v2436_v6 = vpop.f32.mrb[51].mxu0  ;;  %v1496_v7 = vadd.f32 %v1494_v3, %v2817_v0 }
 0xdfb   :  { %v1488_v8 = vpop.f32.mrb[40].mxu1 }
 0xdfc   :  { %v1495_v9 = vmul.f32 0.31622776, %v1488_v8  ;;  %v2441_v10 = vpop.f32.mrb[41].mxu1  ;;  %v1498_v11 = vsel %vm376_vm4, %v1496_v7, -inf }
 0xdfd   :  { %v1491_v12 = vpop.f32.mrb[42].mxu1  ;;  %1499 = vmax.xlane.f32.xlu0 %v1498_v11 }
 0xdfe   :  { %v2442_v13 = vpop.f32.mrb[43].mxu1  ;;  %v1497_v15 = vadd.f32 %v1495_v9, %v2817_v0 }
 0xe00   :  { %v1501_v16 = vsel %vm376_vm4, %v1497_v15, -inf }
 0xe01   :  { %1502 = vmax.xlane.f32.xlu1 %v1501_v16 }
 0xe12   :  { %1570 = vrot.lane.b32.xlu1 %v2991_v42, %s2649_s17 }
 0xe16   :  { %2486 = vrot.lane.b32.xlu1 %v2485_v45, %s2648_s16 }
 0xe1a   :  { %2491 = vrot.lane.b32.xlu1 %v2490_v50, %s2645_s15 }
 0xe1e   :  { %2501 = vrot.lane.b32.xlu1 %v2500_v58, %s2647_s1 }
 0xe8a   :  { %v1500_v17 = vpop.xlane.xlu0 %1499 }
 0xe8b   :  { %v1504_v0 = vsub.f32 %v1496_v7, %v1500_v17 }
 0xe8d   :  { %v1506_v18 = vmul.f32 1.442695, %v1504_v0  ;;  %v2182_v0 = vld [vmem:[%s3229_s3] ss:$0 sm:$0xff]  ;;  %s2653_s3 = smov [#allocation2]  }
 0xe8e   :  { %v1503_v19 = vpop.xlane.xlu1 %1502 }
 0xe8f   :  { %2604 = vpow2.f32 %v1506_v18  ;;  %v1505_v20 = vsub.f32 %v1497_v15, %v1503_v19  ;;  %v2616_v18 = vld [vmem:[%s3226_s0] sm:$0xff] }
 0xe91   :  { %v1508_v21 = vmul.f32 1.442695, %v1505_v20 }
 0xe92   :  { %v1571_v42 = vpop.permute.xlu1 %1570 }
 0xe93   :  { %2606 = vpow2.f32 %v1508_v21  ;;  %v1576_v24 = vsel %vm407_vm5, %v1571_v42, 0 }
 0xe94   :  { %2450 = vmatpush3.bf16.msra.mxu1 %v1576_v24  ;;  %v2617_v24 = vld [vmem:[%s3226_s0 + $0x8] sm:$0xff] }
 0xe96   :  { %v2487_v54 = vpop.permute.xlu1 %2486 }
 0xe97   :  { %v2488_v56 = vunpack.i.l.bf16 %v2487_v54 }
 0xe99   :  { %v2605_v40 = vpop.eup %2604  ;;  %v1658_v2 = vsel %vm277_vm2, %v2863_v47, %v2488_v56 }
 0xe9a   :  { %v1510_v44 = vsel %vm376_vm4, %v2605_v40, 0.0  ;;  %v2492_v55 = vpop.permute.xlu1 %2491 }
 0xe9b   :  { %1511 = vadd.xlane.f32.xlu0 %v1510_v44  ;;  %v2494_v57 = vunpack.i.h.bf16 %v2492_v55  ;;  %v2493_v58 = vunpack.i.l.bf16 %v2492_v55 }
 0xe9d   :  { %v2607_v45 = vpop.eup %2606  ;;  %v1661_v4 = vsel %vm1660_vm6, %v1658_v2, %v2493_v58 }
 0xe9e   :  { %v1513_v39 = vsel %vm376_vm4, %v2607_v45, 0.0  ;;  %v2502_v3 = vpop.permute.xlu1 %2501 }
 0xe9f   :  { %1514 = vadd.xlane.f32.xlu0 %v1513_v39  ;;  %v2504_v8 = vunpack.i.h.bf16 %v2502_v3  ;;  %v2503_v9 = vunpack.i.l.bf16 %v2502_v3  ;;  %v2545_v3 = vld [vmem:[%s3236_s10] sm:$0xff]  }
 0xeb5   :  { %1522 = vrot.lane.b32.xlu0 %v2986_v41, %s2649_s17 }
 0xeb9   :  { %2496 = vrot.lane.b32.xlu0 %v2495_v61, %s2650_s18  ;;  %v2527_v61 = vld [vmem:[%s3228_s2 + $0x8] sm:$0xff]  }
 0xf28   :  { %v1512_v48 = vpop.xlane.xlu0 %1511 }
 0xf29   :  { %2608 = vrcp.f32 %v1512_v48 }
 0xf2c   :  { %v1515_v50 = vpop.xlane.xlu0 %1514 }
 0xf2d   :  { %2610 = vrcp.f32 %v1515_v50 }
 0xf30   :  { %v1523_v25 = vpop.permute.xlu0 %1522 }
 0xf31   :  { %v1528_v26 = vsel %vm407_vm5, %v1523_v25, 0 }
 0xf32   :  { %2444 = vmatpush3.bf16.msra.mxu0 %v1528_v26 }
 0xf33   :  { %v2609_v27 = vpop.eup %2608  ;;  %2455 = vmatprep.subr.bf16.mxu0 %v2643_v23 }
 0xf34   :  { %v1518_v14 = vmul.f32 %v2609_v27, %v2605_v40  ;;  %v2497_v51 = vpop.permute.xlu0 %2496 }
 0xf35   :  { %v2499_v62 = vunpack.i.h.bf16 %v2497_v51  ;;  %v2498_v63 = vunpack.i.l.bf16 %v2497_v51 }
 0xf36   :  { %v1520_v46 = vpack.c.bf16 %v1518_v14, %v1518_v14 }
 0xf37   :  { %v2611_v49 = vpop.eup %2610  ;;  %v1664_v7 = vsel %vm1663_vm7, %v1661_v4, %v2498_v63 }
 0xf38   :  { %v1519_v41 = vmul.f32 %v2611_v49, %v2607_v45  ;;  %2446 = vmatmul.mubr.msk.bf16.vlgmr.msra.gmra.mrb[52].mxu0 %vm376_vm4, %v1520_v46  ;;  %v1666_v13 = vsel %vm47_vm0, %v1664_v7, %v2503_v9  ;;  %v2548_v7 = vld [vmem:[%s3236_s10 + $0x50] sm:$0xff]   ;;  %v2550_v9 = vld [vmem:[%s3236_s10 + $0x58] sm:$0xff]  }
 0xf39   :  { %2467 = vmatprep.mubr.msk.bf16.mxu0 %vm2644_vm1, %v2643_v23  ;;  %2456 = vmatpush3.bf16.msra.mxu0 %v2526_v59 }
 0xf3a   :  { %v1521_v53 = vpack.c.bf16 %v1519_v41, %v1519_v41  ;;  %2457 = vmatprep.subr.bf16.mxu0 %v2643_v23 }
 0xf3c   :  { %2452 = vmatmul.mubr.msk.bf16.vlgmr.msra.gmra.mrb[44].mxu1 %vm376_vm4, %v1521_v53 }
 0xf3d   :  { %1916 = vmatprep.mubr.bf16.mxu1 %v2642_v22  ;;  %2458 = vmatpush3.bf16.msra.mxu0 %v2527_v61  ;;  %v2529_v22 = vld [vmem:[%s3228_s2 + $0x18] sm:$0xff]   ;;  %v2534_v61 = vld [vmem:[%s3234_s8 + $0x4] ss:$8 sps:$4 sm:$0xff]  }
 0xf3e   :  { %2459 = vmatprep.subr.bf16.mxu0 %v2643_v23  ;;  %1884 = vmatprep.subr.bf16.mxu1 %v2534_v61 }
 0xf41   :  { %2460 = vmatpush3.bf16.msra.mxu0 %v2528_v28  ;;  %v2532_v28 = vld [vmem:[%s3234_s8] ss:$8 sps:$4 sm:$0xff]  }
 0xf42   :  { %2461 = vmatprep.subr.bf16.mxu0 %v2643_v23  ;;  %1885 = vmatpush1.bf16.msra.mxu1 %v2532_v28 }
 0xf45   :  { %2462 = vmatpush3.bf16.msra.mxu0 %v2529_v22  ;;  %v2537_v22 = vld [vmem:[%s3234_s8 + $0x14] ss:$8 sps:$4 sm:$0xff]  }
 0xf46   :  { %2463 = vmatprep.subr.bf16.mxu0 %v2643_v23  ;;  %1886 = vmatprep.subr.bf16.mxu1 %v2537_v22 }
 0xf49   :  { %2464 = vmatpush3.bf16.msra.mxu0 %v2530_v30  ;;  %v2535_v30 = vld [vmem:[%s3234_s8 + $0x10] ss:$8 sps:$4 sm:$0xff]  }
 0xf4a   :  { %2465 = vmatprep.subr.bf16.mxu0 %v2643_v23  ;;  %v2489_v23 = vunpack.i.h.bf16 %v2487_v54  ;;  %1887 = vmatpush1.bf16.msra.mxu1 %v2535_v30 }
 0xf4c   :  { %v1659_v1 = vsel %vm277_vm2, %v2865_v52, %v2489_v23  ;;  %v2183_v23 = vld [vmem:[%s3232_s6] ss:$0 sm:$0xff] }
 0xf4d   :  { %2466 = vmatpush3.bf16.msra.mxu0 %v2531_v31  ;;  %v1662_v5 = vsel %vm1660_vm6, %v1659_v1, %v2494_v57  ;;  %v2540_v31 = vld [vmem:[%s3234_s8 + $0x24] ss:$8 sps:$4 sm:$0xff]  }
 0xf4e   :  { %v1665_v6 = vsel %vm1663_vm7, %v1662_v5, %v2499_v62  ;;  %1888 = vmatprep.subr.bf16.mxu1 %v2540_v31  ;;  %v2184_v62 = vld [vmem:[%s3233_s7] ss:$0 sm:$0xff]  ;;  %v2546_v5 = vld [vmem:[%s3236_s10 + $0x48] sm:$0xff]   ;;  %s2118_s7 = sshll.u32 %s2653_s3, 4  ;;  %s2119_s7 = int_to_ptr.vmem [resolvable:$true] %s2118_s7 }
 0xf4f   :  { %v1667_v15 = vsel %vm47_vm0, %v1665_v6, %v2504_v8  ;;  %v2547_v6 = vld [vmem:[%s3236_s10 + $0x8] sm:$0xff]   ;;  %v2549_v8 = vld [vmem:[%s3236_s10 + $0x10] sm:$0xff]   ;;  %s2618_s17 = scalar_lea.vmem %s2119_s7, 256  ;;  %p2623_p1 = scmp.lt.s32.totalorder %s2119_s7, %s2119_s7 }
 0xf50   :  { %p2619_p0 = scmp.ne.s32.totalorder %s2119_s7, %s2618_s17  ;;  %p2624_p2 = scmp.lt.s32.totalorder %s2618_s17, %s2618_s17 }
 0xf52   :  { %p2625_p3 = por %p2624_p2, %p2623_p1 }
 0xf54   :  { %p2626_p4 = pnand %p2625_p3, %p2619_p0 }
0x100b   :  { %v1564_v32 = vpop.f32.mrb[52].mxu0 }
0x100c   :  { %v2447_v33 = vpop.f32.mrb[53].mxu0 }
0x100d   :  { %v1567_v34 = vpop.f32.mrb[54].mxu0  ;;  %v2541_v33 = vld [vmem:[%s3234_s8 + $0x30] ss:$8 sps:$4 sm:$0xff]  }
0x100e   :  { %v2448_v35 = vpop.f32.mrb[55].mxu0  ;;  %v2543_v34 = vld [vmem:[%s3234_s8 + $0x34] ss:$8 sps:$4 sm:$0xff]  }
0x100f   :  { %v1612_v36 = vpop.f32.mrb[44].mxu1  ;;  %v2544_v35 = vld [vmem:[%s3236_s10 + $0x40] sm:$0xff]  }
0x1010   :  { %v2505_v29 = vpack.i.bf16 %v1612_v36, %v1564_v32  ;;  %v2453_v37 = vpop.f32.mrb[45].mxu1  ;;  %v2538_v32 = vld [vmem:[%s3234_s8 + $0x20] ss:$8 sps:$4 sm:$0xff]  }
0x1011   :  { %v1615_v38 = vpop.f32.mrb[46].mxu1  ;;  %1889 = vmatpush1.bf16.msra.mxu1 %v2538_v32 }
0x1012   :  { %v2454_v43 = vpop.f32.mrb[47].mxu1  ;;  %2506 = vrot.lane.b32.xlu0 %v2505_v29, %s2652_s20  ;;  %1890 = vmatprep.subr.bf16.mxu1 %v2543_v34 }
0x1015   :  { %1891 = vmatpush1.bf16.msra.mxu1 %v2541_v33 }
0x1016   :  { %2277 = vmatprep.subr.bf16.mxu1 %v2544_v35 }
0x1084   :  { %v2507_v10 = vpop.permute.xlu0 %2506 }
0x1085   :  { %v2509_v11 = vunpack.i.h.bf16 %v2507_v10  ;;  %v2508_v12 = vunpack.i.l.bf16 %v2507_v10  ;;  %v2551_v10 = vld [vmem:[%s3236_s10 + $0x18] sm:$0xff]  }
0x1087   :  { %v1670_v16 = vsel %vm1668_vm8, %v1667_v15, %v2509_v11  ;;  %v1669_v52 = vsel %vm1668_vm8, %v1666_v13, %v2508_v12  ;;  %v2552_v11 = vld [vmem:[%s3236_s10 + $0x60] sm:$0xff]   ;;  %v2554_v13 = vld [vmem:[%s3236_s10 + $0x68] sm:$0xff]  }
0x1088   :  { %v1671_v17 = vpack.c.bf16 %v1670_v16, %v1669_v52  ;;  %v2553_v12 = vld [vmem:[%s3236_s10 + $0x20] sm:$0xff]   ;;  %v2555_v15 = vld [vmem:[%s3236_s10 + $0x28] sm:$0xff]   ;;  %v2556_v16 = vld [vmem:[%s3236_s10 + $0x70] sm:$0xff]  }
0x1089   :  { %v2557_v52 = vld [vmem:[%s3236_s10 + $0x30] sm:$0xff]  }
0x108a   :  { %2468 = vmatmul.mubr.msk.bf16.vlgmr.msra.gmra.mrb[56].mxu0 %vm1720_vm9, %v1671_v17  ;;  %v2558_v17 = vld [vmem:[%s3236_s10 + $0x78] sm:$0xff]  }
0x115d   :  { %v1758_v47 = vpop.f32.mrb[56].mxu0 }
0x115e   :  { %v1765_v19 = vadd.f32 %v2616_v18, %v1758_v47  ;;  %v2469_v20 = vpop.f32.mrb[57].mxu0  ;;  %v2559_v47 = vld [vmem:[%s3236_s10 + $0x38] sm:$0xff]   ;;  %v1829_v18 = vld [vmem:[%s3235_s9] sm:$0x3] }
0x115f   :  { %v1761_v21 = vpop.f32.mrb[58].mxu0 }
0x1160   :  { %v3108_v42 = vadd.f32 %v2182_v0, %v1765_v19  ;;  %v1766_v40 = vadd.f32 %v2617_v24, %v1761_v21  ;;  %v2470_v44 = vpop.f32.mrb[59].mxu0  ;;  %v1837_v19 = vsub.s32 1, %v2814_v60 }
0x1162   :  { %v3113_v45 = vadd.f32 %v2182_v0, %v1766_v40  ;;  %v1778_v39 = vsel %vm47_vm0, %v3108_v42, 0.0  ;;  %v1833_v0 = vsub.s32 0, %v2814_v60  ;;  %v1838_v21 = vrot.slane %v1829_v18, %v1837_v19  ;;  %v2194_v60 = vld [vmem:[%s3237_s11] ss:$0 sm:$0xff] }
0x1163   :  { %1779 = vadd.xlane.f32.xlu1 %v1778_v39 }
0x1164   :  { %v1781_v48 = vsel %vm47_vm0, %v3113_v45, 0.0  ;;  %v1834_v20 = vrot.slane %v1829_v18, %v1833_v0 }
0x1165   :  { %1782 = vadd.xlane.f32.xlu0 %v1781_v48 }
0x11f0   :  { %v1780_v50 = vpop.xlane.xlu1 %1779 }
0x11f1   :  { %v1784_v25 = vmul.f32 0.015625, %v1780_v50 }
0x11f2   :  { %v1783_v26 = vpop.xlane.xlu0 %1782 }
0x11f3   :  { %v1786_v27 = vsub.f32 %v3108_v42, %v1784_v25  ;;  %v1785_v14 = vmul.f32 0.015625, %v1783_v26 }
0x11f5   :  { %v1787_v46 = vsub.f32 %v3113_v45, %v1785_v14  ;;  %v1788_v49 = vmul.f32 %v1786_v27, %v1786_v27 }
0x11f7   :  { %v1790_v41 = vsel %vm47_vm0, %v1788_v49, 0.0  ;;  %v1789_v53 = vmul.f32 %v1787_v46, %v1787_v46 }
0x11f8   :  { %1791 = vadd.xlane.f32.xlu0 %v1790_v41 }
0x11f9   :  { %v1793_v59 = vsel %vm47_vm0, %v1789_v53, 0.0 }
0x11fc   :  { %1794 = vadd.xlane.f32.xlu0 %v1793_v59 }
0x1285   :  { %v1792_v36 = vpop.xlane.xlu0 %1791 }
0x1286   :  { %v1796_v29 = vmul.f32 0.015625, %v1792_v36 }
0x1288   :  { %v1798_v37 = vadd.f32 1e-05, %v1796_v29 }
0x1289   :  { %v1795_v38 = vpop.xlane.xlu0 %1794 }
0x128a   :  { %2612 = vrsqrt.f32 %v1798_v37  ;;  %v1797_v43 = vmul.f32 0.015625, %v1795_v38 }
0x128c   :  { %v1799_v54 = vadd.f32 1e-05, %v1797_v43 }
0x128e   :  { %2614 = vrsqrt.f32 %v1799_v54 }
0x1294   :  { %v2613_v55 = vpop.eup %2612 }
0x1295   :  { %v1802_v51 = vmul.f32 %v2613_v55, %v1786_v27 }
0x1297   :  { %v1810_v57 = vmul.f32 %v2183_v23, %v1802_v51 }
0x1298   :  { %v2615_v56 = vpop.eup %2614 }
0x1299   :  { %v1803_v58 = vmul.f32 %v2615_v56, %v1787_v46  ;;  %v1818_v1 = vadd.f32 %v2184_v62, %v1810_v57 }
0x129b   :  { %v1811_v63 = vmul.f32 %v2183_v23, %v1803_v58 }
0x129d   :  { %v1819_v2 = vadd.f32 %v2184_v62, %v1811_v63 }
0x129f   :  { %v1820_v4 = vpack.c.bf16 %v1819_v2, %v1818_v1 }
0x12a1   :  { %2193 = vmatmul.mubr.msk.bf16.vlgmr.msra.gmra.mrb[48].mxu1 %vm47_vm0, %v1820_v4 }
0x12a2   :  { %2278 = vmatpush3.bf16.msra.mxu1 %v2545_v3 }
0x12a3   :  { %2279 = vmatprep.subr.bf16.mxu1 %v2546_v5 }
0x12a6   :  { %2280 = vmatpush3.bf16.msra.mxu1 %v2547_v6 }
0x12a7   :  { %2281 = vmatprep.subr.bf16.mxu1 %v2548_v7 }
0x12aa   :  { %2282 = vmatpush3.bf16.msra.mxu1 %v2549_v8 }
0x12ab   :  { %2283 = vmatprep.subr.bf16.mxu1 %v2550_v9 }
0x12ae   :  { %2284 = vmatpush3.bf16.msra.mxu1 %v2551_v10 }
0x12af   :  { %2285 = vmatprep.subr.bf16.mxu1 %v2552_v11 }
0x12b2   :  { %2286 = vmatpush3.bf16.msra.mxu1 %v2553_v12 }
0x12b3   :  { %2287 = vmatprep.subr.bf16.mxu1 %v2554_v13 }
0x12b6   :  { %2288 = vmatpush3.bf16.msra.mxu1 %v2555_v15 }
0x12b7   :  { %2289 = vmatprep.subr.bf16.mxu1 %v2556_v16 }
0x12ba   :  { %2290 = vmatpush3.bf16.msra.mxu1 %v2557_v52 }
0x12bb   :  { %2291 = vmatprep.subr.bf16.mxu1 %v2558_v17 }
0x12be   :  { %2292 = vmatpush3.bf16.msra.mxu1 %v2559_v47 }
0x1374   :  { %v1918_v24 = vpop.f32.mrb[48].mxu1 }
0x1375   :  { %v1919_v40 = vadd.f32 %v1918_v24, %v1834_v20  ;;  %v1920_v44 = vpop.f32.mrb[49].mxu1 }
0x1376   :  { %v1921_v39 = vadd.f32 %v1920_v44, %v1838_v21  ;;  %v1922_v48 = vpop.f32.mrb[50].mxu1 }
0x1377   :  { %v1923_v50 = vadd.f32 %v1922_v48, %v1834_v20  ;;  %v1924_v25 = vpop.f32.mrb[51].mxu1  ;;  %v1927_v27 = vmax.f32 %v1919_v40, 0.0 }
0x1378   :  { %v1925_v26 = vadd.f32 %v1924_v25, %v1838_v21  ;;  %v1928_v46 = vmax.f32 %v1921_v39, 0.0 }
0x1379   :  { %v1929_v14 = vmax.f32 %v1923_v50, 0.0 }
0x137a   :  { %v1930_v49 = vmax.f32 %v1925_v26, 0.0 }
0x137b   :  { %v1931_v41 = vpack.c.bf16 %v1929_v14, %v1927_v27 }
0x137c   :  { %v1932_v53 = vpack.c.bf16 %v1930_v49, %v1928_v46 }
0x137e   :  { %2100 = vmatprep.mubr.bf16.mxu1 %v1932_v53 }
0x137f   :  { %2101 = vmatmul.mubr.bf16.vlgmr.msra.gmra.mrb[52].mxu1 %v1931_v41 }
0x1452   :  { %v2293_v59 = vpop.f32.mrb[52].mxu1 }
0x1453   :  { %v2294_v61 = vpop.f32.mrb[53].mxu1 }
0x1454   :  { %v2295_v28 = vadd.f32 %v2294_v61, %v2293_v59  ;;  %v2296_v22 = vpop.f32.mrb[54].mxu1 }
0x1455   :  { %v2297_v30 = vpop.f32.mrb[55].mxu1 }
0x1456   :  { %v2103_v31 = vadd.f32 %v2295_v28, %v2194_v60  ;;  %v2298_v32 = vadd.f32 %v2297_v30, %v2296_v22 }
0x1458   :  { %v2109_v33 = vadd.f32 %v2103_v31, %v3108_v42  ;;  %v2106_v34 = vadd.f32 %v2298_v32, %v2194_v60 }
0x145a   :  { %2111 = vst.msk [vmem:[#allocation2] sm:$0xff] %vm47_vm0, %v2109_v33  ;;  %v2110_v35 = vadd.f32 %v2106_v34, %v3113_v45 }
0x145c   :  { %2112 = vst.msk [vmem:[#allocation2 + $0x8] sm:$0xff] %vm47_vm0, %v2110_v35 }
0x145d   :  { %2629 = shalt.err (!%p2626_p4)
}
0x145e   :  { %s2630_s19 = scalar_lea.hbm %s3238_s12, 256 }
0x145f   :  { %p2631_p5 = scmp.ne.s32.totalorder %s3238_s12, %s2630_s19  ;;  %p2634_p6 = scmp.lt.u32.totalorder %s2630_s19, %s3238_s12 }
0x1461   :  { %p2636_p7 = pnand %p2634_p6, %p2631_p5 }
0x1463   :  { %2639 = shalt.err (!%p2636_p7)
}
0x1464   :  { %s2654_s24 = smov 128   ;;  %s2655_s25 = smov 8  }
0x1465   :  { %2124 = dma.vmem_to_hbm [thread:$0]  %s2119_s7, 256, %s3238_s12, [#allocation3], %s2654_s24, %s2654_s24, %s2655_s25  }
0x1466   :  { %2640 = dma.done.wait [#allocation3], 256  }
0x1467   :  { %2641 = vsyncadd [#allocation3], 4294967040 }
0x1468   :  { %2128 = vsyncpa [#allocation3], 1 }

</bundles_post_ra>
